<compile_context>
chip_gen: v7x
topology: tpu7x:2x2x1
jax: 0.10.0
libtpu: 0.0.40
codegen_flags: <defaults>
</compile_context>

<pallas_src>
import jax
import jax.numpy as jnp
from jax.experimental import pallas as pl
from jax.experimental.pallas import tpu as pltpu


# ----------------------------------------------------------------------------
# In-kernel helpers
# ----------------------------------------------------------------------------
def _im2col(xp, K, Ho, Wo):
    """xp: (Ho+K-1, Wo+K-1, C) value -> (Ho*Wo, K*K*C) patch matrix.

    Only K sublane-shifted slices are materialized (kw shifts); kh shifts are cheap
    major-dim slices. All K*K taps are folded into the matmul contraction dimension.
    Channel order is (kh, kw, c), matching weight.reshape(K*K*C, Cout) of an HWIO weight.
    """
    C = xp.shape[-1]
    cols = [xp[:, kw:kw + Wo, :] for kw in range(K)]                 # K W-shifted slabs
    taps = [cols[kw][kh:kh + Ho] for kh in range(K) for kw in range(K)]
    patch = jnp.concatenate(taps, axis=-1)                           # (Ho, Wo, K*K*C)
    return patch.reshape(Ho * Wo, K * K * C)


def _make_resblock_kernel(*, K1, H1, W1, Ho, Wo, Cin, Cout, has_proj):
    """Fused residual block for one image: conv1+BN1+ReLU -> conv2+BN2 -> +right -> ReLU."""

    def kernel(*refs):
        if has_proj:
            (x_ref, w1_ref, w2_ref, wr_ref,
             s1_ref, b1_ref, s2_ref, b2_ref, sr_ref, br_ref,
             o_ref, xpad, l1pad) = refs
        else:
            (x_ref, w1_ref, w2_ref,
             s1_ref, b1_ref, s2_ref, b2_ref,
             o_ref, xpad, l1pad) = refs

        xv = x_ref[0]                                                # (H1, W1, C1) bf16

        # conv1 halo padding done in VMEM (no wrapper-side jnp.pad / extra HBM copy).
        xpad[...] = jnp.zeros_like(xpad)
        xpad[1:1 + H1, 1:1 + W1, :] = xv

        # conv1 + BN1 + ReLU — single MXU matmul, K1*K1*C1-deep contraction, f32 accumulate.
        p1 = _im2col(xpad[...], K1, Ho, Wo)
        acc1 = jnp.dot(p1, w1_ref[...], preferred_element_type=jnp.float32)
        l1 = jnp.maximum(acc1 * s1_ref[0] + b1_ref[0], 0.0)          # (Ho*Wo, Cout) f32

        # Intermediate activation (+1-px halo) stays resident in VMEM; never touches HBM.
        l1pad[...] = jnp.zeros_like(l1pad)
        l1pad[1:1 + Ho, 1:1 + Wo, :] = l1.reshape(Ho, Wo, Cout).astype(l1pad.dtype)

        # conv2 + BN2 — single MXU matmul, 9*Cout-deep contraction.
        p2 = _im2col(l1pad[...], 3, Ho, Wo)
        acc2 = jnp.dot(p2, w2_ref[...], preferred_element_type=jnp.float32)
        y = acc2 * s2_ref[0] + b2_ref[0]                             # (Ho*Wo, Cout) f32

        # Right branch.
        if has_proj:
            # 1x1 stride-2 conv == matmul on the (even-row, even-col) pixels, which are
            # exactly channels [0:Cin] of the space-to-depth input.
            xr = xv[:, :, :Cin].reshape(Ho * Wo, Cin)
            r = jnp.dot(xr, wr_ref[...], preferred_element_type=jnp.float32)
            r = r * sr_ref[0] + br_ref[0]
        else:
            r = xv.reshape(Ho * Wo, Cin).astype(jnp.float32)         # identity (Cin == Cout)

        out = jnp.maximum(y + r, 0.0)
        o_ref[0] = out.reshape(Ho, Wo, Cout).astype(o_ref.dtype)

    return kernel


# ----------------------------------------------------------------------------
# ResidualBlock forward (Pallas) — public API is NCHW like PyTorch.
# ----------------------------------------------------------------------------
def residual_block_pallas(x_nchw, params, first_stride):
    x = jnp.transpose(x_nchw, (0, 2, 3, 1))                          # NCHW -> NHWC
    N, H, W, Cin = x.shape
    Cout = params["w1"].shape[-1]
    s = first_stride

    if s == 1:
        assert Cin == Cout, "identity shortcut requires in_feats == out_feats"
        K1 = 3
        x_in = x                                                     # (N, H, W, Cin)
        w1_flat = params["w1"].reshape(9 * Cin, Cout)
        has_proj = False
    elif s == 2:
        assert H % 2 == 0 and W % 2 == 0
        K1 = 2
        Ho_, Wo_ = H // 2, W // 2
        # space-to-depth: 3x3/stride-2/pad-1 conv == 2x2/stride-1 conv over 2x2 pixel blocks.
        xs = x.reshape(N, Ho_, 2, Wo_, 2, Cin).transpose(0, 1, 3, 2, 4, 5)
        x_in = xs.reshape(N, Ho_, Wo_, 4 * Cin)                      # ch = (rowpar, colpar, c)
        w1 = params["w1"]                                            # (3, 3, Cin, Cout) HWIO
        w1_2x2 = jnp.zeros((2, 2, 2, 2, Cin, Cout), w1.dtype)        # (dh, dw, ph, pw, c, co)
        kmap = [(0, 1), (1, 0), (1, 1)]                              # k -> (block offset, parity)
        for kh in range(3):
            dh, ph = kmap[kh]
            for kw in range(3):
                dw, pw = kmap[kw]
                w1_2x2 = w1_2x2.at[dh, dw, ph, pw].set(w1[kh, kw])
        w1_flat = w1_2x2.reshape(4 * 4 * Cin, Cout)                  # 7/16 rows are zero padding
        has_proj = True
    else:
        # TODO(synk): general first_stride > 2 (unused by ResNet) is not implemented.
        raise NotImplementedError("first_stride must be 1 or 2")

    _, H1, W1, C1 = x_in.shape
    Ho, Wo = H // s, W // s
    w2_flat = params["w2"].reshape(9 * Cout, Cout)

    # bf16 operands for the MXU; f32 accumulation + f32 epilogue inside the kernel.
    bf16 = jnp.bfloat16
    x_in = x_in.astype(bf16)
    w1_flat = w1_flat.astype(bf16)
    w2_flat = w2_flat.astype(bf16)

    def vec(p):                                                      # (Cout,) -> (1, Cout) f32
        return p.reshape(1, Cout).astype(jnp.float32)

    per_n = lambda n: (n, 0, 0, 0)
    const2d = lambda n: (0, 0)

    args = [x_in, w1_flat, w2_flat]
    in_specs = [
        pl.BlockSpec((1, H1, W1, C1), per_n),
        pl.BlockSpec(tuple(w1_flat.shape), const2d),
        pl.BlockSpec(tuple(w2_flat.shape), const2d),
    ]
    if has_proj:
        args.append(params["wr"].reshape(Cin, Cout).astype(bf16))
        in_specs.append(pl.BlockSpec((Cin, Cout), const2d))
    args += [vec(params["s1"]), vec(params["b1"]), vec(params["s2"]), vec(params["b2"])]
    in_specs += [pl.BlockSpec((1, Cout), const2d)] * 4
    if has_proj:
        args += [vec(params["sr"]), vec(params["br"])]
        in_specs += [pl.BlockSpec((1, Cout), const2d)] * 2

    pad_hi = 1 if K1 == 3 else 0    # the 2x2 (space-to-depth) conv only needs a top/left halo
    kernel = _make_resblock_kernel(K1=K1, H1=H1, W1=W1, Ho=Ho, Wo=Wo,
                                   Cin=Cin, Cout=Cout, has_proj=has_proj)

    out = pl.pallas_call(
        kernel,
        out_shape=jax.ShapeDtypeStruct((N, Ho, Wo, Cout), jnp.float32),
        grid=(N,),
        in_specs=in_specs,
        out_specs=pl.BlockSpec((1, Ho, Wo, Cout), per_n),
        scratch_shapes=[
            pltpu.VMEM((H1 + 1 + pad_hi, W1 + 1 + pad_hi, C1), bf16),  # padded conv1 input
            pltpu.VMEM((Ho + 2, Wo + 2, Cout), bf16),                  # padded intermediate l1
        ],
        compiler_params=pltpu.CompilerParams(dimension_semantics=("parallel",)),
        # TODO(synk): for ResNet-scale H/W, add an output-row grid axis (with halo'd input
        # index_map) so per-step VMEM stays within v7x's 64 MiB and both TensorCores get work.
    )(*args)

    return jnp.transpose(out, (0, 3, 1, 2))                          # NHWC -> NCHW


# ----------------------------------------------------------------------------
# Pure-JAX f32 reference (correctness check only).
# ----------------------------------------------------------------------------
def _conv_ref(x_nhwc, w_hwio, stride, padding):
    return jax.lax.conv_general_dilated(
        x_nhwc, w_hwio, window_strides=(stride, stride), padding=padding,
        dimension_numbers=("NHWC", "HWIO", "NHWC"),
        precision=jax.lax.Precision.HIGHEST,
    )


def residual_block_ref(x_nchw, params, first_stride):
    x = jnp.transpose(x_nchw, (0, 2, 3, 1))
    l = _conv_ref(x, params["w1"], first_stride, [(1, 1), (1, 1)])
    l = jnp.maximum(l * params["s1"] + params["b1"], 0.0)
    l = _conv_ref(l, params["w2"], 1, [(1, 1), (1, 1)])
    l = l * params["s2"] + params["b2"]
    if first_stride > 1:
        r = _conv_ref(x, params["wr"], first_stride, [(0, 0), (0, 0)])
        r = r * params["sr"] + params["br"]
    else:
        r = x
    out = jnp.maximum(l + r, 0.0)
    return jnp.transpose(out, (0, 3, 1, 2))


# ----------------------------------------------------------------------------
# Deterministic parameters. BN (eps=1e-5) folded: scale=gamma/sqrt(var+eps),
# shift=beta-mean*scale. Conv weights generated directly in HWIO.
# ----------------------------------------------------------------------------
def make_params(key, in_feats, out_feats, first_stride, eps=1e-5):
    keys = jax.random.split(key, 16)

    def bn_fold(k0, k1, k2, k3, c):
        gamma = 1.0 + 0.1 * jax.random.normal(k0, (c,), jnp.float32)
        beta = 0.1 * jax.random.normal(k1, (c,), jnp.float32)
        rmean = 0.1 * jax.random.normal(k2, (c,), jnp.float32)
        rvar = jax.random.uniform(k3, (c,), jnp.float32, minval=0.5, maxval=1.5)
        scale = gamma / jnp.sqrt(rvar + eps)
        shift = beta - rmean * scale
        return scale, shift

    w1 = 0.1 * jax.random.normal(keys[0], (3, 3, in_feats, out_feats), jnp.float32)
    s1, b1 = bn_fold(keys[1], keys[2], keys[3], keys[4], out_feats)
    w2 = 0.1 * jax.random.normal(keys[5], (3, 3, out_feats, out_feats), jnp.float32)
    s2, b2 = bn_fold(keys[6], keys[7], keys[8], keys[9], out_feats)
    params = dict(w1=w1, s1=s1, b1=b1, w2=w2, s2=s2, b2=b2)
    if first_stride > 1:
        wr = 0.1 * jax.random.normal(keys[10], (1, 1, in_feats, out_feats), jnp.float32)
        sr, br = bn_fold(keys[11], keys[12], keys[13], keys[14], out_feats)
        params.update(wr=wr, sr=sr, br=br)
    return params


if __name__ == "__main__":
    key = jax.random.PRNGKey(0)
    k_params, k_x, k_params2, k_x2 = jax.random.split(key, 4)

    # Case 1: downsampling block (first_stride=2, in_feats != out_feats).
    N, Cin, Cout, H, W, stride = 2, 4, 8, 16, 16, 2
    params = make_params(k_params, Cin, Cout, stride)
    x = jax.random.normal(k_x, (N, Cin, H, W), jnp.float32)

    out = jax.block_until_ready(residual_block_pallas(x, params, stride))
    ref = residual_block_ref(x, params, stride)
    assert out.shape == (N, Cout, H // stride, W // stride), out.shape
    # bf16 MXU operands with f32 accumulation -> compare against the f32 reference loosely.
    assert jnp.allclose(out, ref, atol=2e-2, rtol=2e-2), float(jnp.max(jnp.abs(out - ref)))

    # Case 2: identity block (first_stride=1, in_feats == out_feats).
    N2, C2, H2, W2 = 2, 8, 8, 8
    params2 = make_params(k_params2, C2, C2, 1)
    x2 = jax.random.normal(k_x2, (N2, C2, H2, W2), jnp.float32)

    out2 = jax.block_until_ready(residual_block_pallas(x2, params2, 1))
    ref2 = residual_block_ref(x2, params2, 1)
    assert out2.shape == (N2, C2, H2, W2), out2.shape
    assert jnp.allclose(out2, ref2, atol=2e-2, rtol=2e-2), float(jnp.max(jnp.abs(out2 - ref2)))

    print("KERNEL_OK")
</pallas_src>

<mosaic_0001>
module attributes {stable_mosaic.version = 11 : i64} {
  func.func @kernel(%arg0: i32, %arg1: memref<1x8x8x16xbf16, #tpu.memory_space<vmem>>, %arg2: memref<64x8xbf16, #tpu.memory_space<vmem>>, %arg3: memref<72x8xbf16, #tpu.memory_space<vmem>>, %arg4: memref<4x8xbf16, #tpu.memory_space<vmem>>, %arg5: memref<1x8xf32, #tpu.memory_space<vmem>>, %arg6: memref<1x8xf32, #tpu.memory_space<vmem>>, %arg7: memref<1x8xf32, #tpu.memory_space<vmem>>, %arg8: memref<1x8xf32, #tpu.memory_space<vmem>>, %arg9: memref<1x8xf32, #tpu.memory_space<vmem>>, %arg10: memref<1x8xf32, #tpu.memory_space<vmem>>, %arg11: memref<1x8x8x8xf32, #tpu.memory_space<vmem>>, %arg12: memref<9x9x16xbf16, #tpu.memory_space<vmem>>, %arg13: memref<10x10x8xbf16, #tpu.memory_space<vmem>>) attributes {dimension_semantics = [#tpu.dimension_semantics<parallel>], iteration_bounds = array<i64: 2>, scalar_prefetch = 0 : i64, scratch_operands = 2 : i64, tpu.core_type = #tpu.core_type<tc>, window_params = [{transform_indices = @transform_0, window_bounds = array<i64: 1, 8, 8, 16>}, {pipeline_mode = #tpu.pipeline_mode<synchronous>, transform_indices = @transform_1, window_bounds = array<i64: 64, 8>}, {pipeline_mode = #tpu.pipeline_mode<synchronous>, transform_indices = @transform_2, window_bounds = array<i64: 72, 8>}, {pipeline_mode = #tpu.pipeline_mode<synchronous>, transform_indices = @transform_3, window_bounds = array<i64: 4, 8>}, {pipeline_mode = #tpu.pipeline_mode<synchronous>, transform_indices = @transform_4, window_bounds = array<i64: 1, 8>}, {pipeline_mode = #tpu.pipeline_mode<synchronous>, transform_indices = @transform_5, window_bounds = array<i64: 1, 8>}, {pipeline_mode = #tpu.pipeline_mode<synchronous>, transform_indices = @transform_6, window_bounds = array<i64: 1, 8>}, {pipeline_mode = #tpu.pipeline_mode<synchronous>, transform_indices = @transform_7, window_bounds = array<i64: 1, 8>}, {pipeline_mode = #tpu.pipeline_mode<synchronous>, transform_indices = @transform_8, window_bounds = array<i64: 1, 8>}, {pipeline_mode = #tpu.pipeline_mode<synchronous>, transform_indices = @transform_9, window_bounds = array<i64: 1, 8>}, {transform_indices = @transform_10, window_bounds = array<i64: 1, 8, 8, 8>}]} {
    %c0 = arith.constant 0 : index
    %c0_0 = arith.constant 0 : index
    %c0_1 = arith.constant 0 : index
    %c0_2 = arith.constant 0 : index
    %0 = vector.load %arg1[%c0, %c0_0, %c0_1, %c0_2] : memref<1x8x8x16xbf16, #tpu.memory_space<vmem>>, vector<1x8x8x16xbf16>
    %1 = vector.shape_cast %0 : vector<1x8x8x16xbf16> to vector<8x8x16xbf16>
    %cst = arith.constant 0.000000e+00 : bf16
    %2 = vector.broadcast %cst : bf16 to vector<9x9x16xbf16>
    %c0_3 = arith.constant 0 : index
    %c0_4 = arith.constant 0 : index
    %c0_5 = arith.constant 0 : index
    %3 = vector.load %arg12[%c0_3, %c0_4, %c0_5] : memref<9x9x16xbf16, #tpu.memory_space<vmem>>, vector<9x9x16xbf16>
    tpu.vector_store %arg12[%c0_3, %c0_4, %c0_5], %2 {strides = array<i32>} : memref<9x9x16xbf16, #tpu.memory_space<vmem>>, vector<9x9x16xbf16>,
    %c1 = arith.constant 1 : index
    %c1_6 = arith.constant 1 : index
    %c0_7 = arith.constant 0 : index
    %4 = vector.load %arg12[%c1, %c1_6, %c0_7] : memref<9x9x16xbf16, #tpu.memory_space<vmem>>, vector<8x8x16xbf16>
    tpu.vector_store %arg12[%c1, %c1_6, %c0_7], %1 {strides = array<i32>} : memref<9x9x16xbf16, #tpu.memory_space<vmem>>, vector<8x8x16xbf16>,
    %c0_8 = arith.constant 0 : index
    %c0_9 = arith.constant 0 : index
    %c0_10 = arith.constant 0 : index
    %5 = vector.load %arg12[%c0_8, %c0_9, %c0_10] : memref<9x9x16xbf16, #tpu.memory_space<vmem>>, vector<9x9x16xbf16>
    %6 = vector.extract_strided_slice %5 {offsets = [0, 0, 0], sizes = [9, 8, 16], strides = [1, 1, 1]} : vector<9x9x16xbf16> to vector<9x8x16xbf16>
    %7 = vector.extract_strided_slice %5 {offsets = [0, 1, 0], sizes = [9, 8, 16], strides = [1, 1, 1]} : vector<9x9x16xbf16> to vector<9x8x16xbf16>
    %8 = vector.extract_strided_slice %6 {offsets = [0, 0, 0], sizes = [8, 8, 16], strides = [1, 1, 1]} : vector<9x8x16xbf16> to vector<8x8x16xbf16>
    %9 = vector.extract_strided_slice %7 {offsets = [0, 0, 0], sizes = [8, 8, 16], strides = [1, 1, 1]} : vector<9x8x16xbf16> to vector<8x8x16xbf16>
    %10 = vector.extract_strided_slice %6 {offsets = [1, 0, 0], sizes = [8, 8, 16], strides = [1, 1, 1]} : vector<9x8x16xbf16> to vector<8x8x16xbf16>
    %11 = vector.extract_strided_slice %7 {offsets = [1, 0, 0], sizes = [8, 8, 16], strides = [1, 1, 1]} : vector<9x8x16xbf16> to vector<8x8x16xbf16>
    %12 = tpu.concatenate %8, %9, %10, %11 in 2 : vector<8x8x16xbf16>, vector<8x8x16xbf16>, vector<8x8x16xbf16>, vector<8x8x16xbf16> -> vector<8x8x64xbf16>
    %13 = vector.shape_cast %12 : vector<8x8x64xbf16> to vector<64x64xbf16>
    %c0_11 = arith.constant 0 : index
    %c0_12 = arith.constant 0 : index
    %14 = vector.load %arg2[%c0_11, %c0_12] : memref<64x8xbf16, #tpu.memory_space<vmem>>, vector<64x8xbf16>
    %cst_13 = arith.constant dense<0.000000e+00> : vector<64x8xf32>
    %15 = tpu.matmul %13, %14, %cst_13 {dimension_numbers = #tpu.dot_dimension_numbers<[1], [0], [0], [1], [0, 0, 1, 1], [], []>} : vector<64x64xbf16>, vector<64x8xbf16>, vector<64x8xf32> -> vector<64x8xf32>
    %c0_14 = arith.constant 0 : index
    %c0_15 = arith.constant 0 : index
    %16 = vector.load %arg5[%c0_14, %c0_15] : memref<1x8xf32, #tpu.memory_space<vmem>>, vector<1x8xf32>
    %17 = vector.shape_cast %16 : vector<1x8xf32> to vector<8xf32>
    %18 = vector.shape_cast %17 : vector<8xf32> to vector<1x8xf32>
    %19 = vector.broadcast %18 : vector<1x8xf32> to vector<64x8xf32>
    %20 = arith.mulf %15, %19 : vector<64x8xf32>
    %c0_16 = arith.constant 0 : index
    %c0_17 = arith.constant 0 : index
    %21 = vector.load %arg6[%c0_16, %c0_17] : memref<1x8xf32, #tpu.memory_space<vmem>>, vector<1x8xf32>
    %22 = vector.shape_cast %21 : vector<1x8xf32> to vector<8xf32>
    %23 = vector.shape_cast %22 : vector<8xf32> to vector<1x8xf32>
    %24 = vector.broadcast %23 : vector<1x8xf32> to vector<64x8xf32>
    %25 = arith.addf %20, %24 : vector<64x8xf32>
    %cst_18 = arith.constant 0.000000e+00 : f32
    %26 = vector.broadcast %cst_18 : f32 to vector<64x8xf32>
    %27 = arith.maximumf %25, %26 : vector<64x8xf32>
    %cst_19 = arith.constant 0.000000e+00 : bf16
    %28 = vector.broadcast %cst_19 : bf16 to vector<10x10x8xbf16>
    %c0_20 = arith.constant 0 : index
    %c0_21 = arith.constant 0 : index
    %c0_22 = arith.constant 0 : index
    %29 = vector.load %arg13[%c0_20, %c0_21, %c0_22] : memref<10x10x8xbf16, #tpu.memory_space<vmem>>, vector<10x10x8xbf16>
    tpu.vector_store %arg13[%c0_20, %c0_21, %c0_22], %28 {strides = array<i32>} : memref<10x10x8xbf16, #tpu.memory_space<vmem>>, vector<10x10x8xbf16>,
    %30 = vector.shape_cast %27 : vector<64x8xf32> to vector<8x8x8xf32>
    %31 = arith.truncf %30 : vector<8x8x8xf32> to vector<8x8x8xbf16>
    %c1_23 = arith.constant 1 : index
    %c1_24 = arith.constant 1 : index
    %c0_25 = arith.constant 0 : index
    %32 = vector.load %arg13[%c1_23, %c1_24, %c0_25] : memref<10x10x8xbf16, #tpu.memory_space<vmem>>, vector<8x8x8xbf16>
    tpu.vector_store %arg13[%c1_23, %c1_24, %c0_25], %31 {strides = array<i32>} : memref<10x10x8xbf16, #tpu.memory_space<vmem>>, vector<8x8x8xbf16>,
    %c0_26 = arith.constant 0 : index
    %c0_27 = arith.constant 0 : index
    %c0_28 = arith.constant 0 : index
    %33 = vector.load %arg13[%c0_26, %c0_27, %c0_28] : memref<10x10x8xbf16, #tpu.memory_space<vmem>>, vector<10x10x8xbf16>
    %34 = vector.extract_strided_slice %33 {offsets = [0, 0, 0], sizes = [10, 8, 8], strides = [1, 1, 1]} : vector<10x10x8xbf16> to vector<10x8x8xbf16>
    %35 = vector.extract_strided_slice %33 {offsets = [0, 1, 0], sizes = [10, 8, 8], strides = [1, 1, 1]} : vector<10x10x8xbf16> to vector<10x8x8xbf16>
    %36 = vector.extract_strided_slice %33 {offsets = [0, 2, 0], sizes = [10, 8, 8], strides = [1, 1, 1]} : vector<10x10x8xbf16> to vector<10x8x8xbf16>
    %37 = vector.extract_strided_slice %34 {offsets = [0, 0, 0], sizes = [8, 8, 8], strides = [1, 1, 1]} : vector<10x8x8xbf16> to vector<8x8x8xbf16>
    %38 = vector.extract_strided_slice %35 {offsets = [0, 0, 0], sizes = [8, 8, 8], strides = [1, 1, 1]} : vector<10x8x8xbf16> to vector<8x8x8xbf16>
    %39 = vector.extract_strided_slice %36 {offsets = [0, 0, 0], sizes = [8, 8, 8], strides = [1, 1, 1]} : vector<10x8x8xbf16> to vector<8x8x8xbf16>
    %40 = vector.extract_strided_slice %34 {offsets = [1, 0, 0], sizes = [8, 8, 8], strides = [1, 1, 1]} : vector<10x8x8xbf16> to vector<8x8x8xbf16>
    %41 = vector.extract_strided_slice %35 {offsets = [1, 0, 0], sizes = [8, 8, 8], strides = [1, 1, 1]} : vector<10x8x8xbf16> to vector<8x8x8xbf16>
    %42 = vector.extract_strided_slice %36 {offsets = [1, 0, 0], sizes = [8, 8, 8], strides = [1, 1, 1]} : vector<10x8x8xbf16> to vector<8x8x8xbf16>
    %43 = vector.extract_strided_slice %34 {offsets = [2, 0, 0], sizes = [8, 8, 8], strides = [1, 1, 1]} : vector<10x8x8xbf16> to vector<8x8x8xbf16>
    %44 = vector.extract_strided_slice %35 {offsets = [2, 0, 0], sizes = [8, 8, 8], strides = [1, 1, 1]} : vector<10x8x8xbf16> to vector<8x8x8xbf16>
    %45 = vector.extract_strided_slice %36 {offsets = [2, 0, 0], sizes = [8, 8, 8], strides = [1, 1, 1]} : vector<10x8x8xbf16> to vector<8x8x8xbf16>
    %46 = tpu.concatenate %37, %38, %39, %40, %41, %42, %43, %44, %45 in 2 : vector<8x8x8xbf16>, vector<8x8x8xbf16>, vector<8x8x8xbf16>, vector<8x8x8xbf16>, vector<8x8x8xbf16>, vector<8x8x8xbf16>, vector<8x8x8xbf16>, vector<8x8x8xbf16>, vector<8x8x8xbf16> -> vector<8x8x72xbf16>
    %47 = vector.shape_cast %46 : vector<8x8x72xbf16> to vector<64x72xbf16>
    %c0_29 = arith.constant 0 : index
    %c0_30 = arith.constant 0 : index
    %48 = vector.load %arg3[%c0_29, %c0_30] : memref<72x8xbf16, #tpu.memory_space<vmem>>, vector<72x8xbf16>
    %cst_31 = arith.constant dense<0.000000e+00> : vector<64x8xf32>
    %49 = tpu.matmul %47, %48, %cst_31 {dimension_numbers = #tpu.dot_dimension_numbers<[1], [0], [0], [1], [0, 0, 1, 1], [], []>} : vector<64x72xbf16>, vector<72x8xbf16>, vector<64x8xf32> -> vector<64x8xf32>
    %c0_32 = arith.constant 0 : index
    %c0_33 = arith.constant 0 : index
    %50 = vector.load %arg7[%c0_32, %c0_33] : memref<1x8xf32, #tpu.memory_space<vmem>>, vector<1x8xf32>
    %51 = vector.shape_cast %50 : vector<1x8xf32> to vector<8xf32>
    %52 = vector.shape_cast %51 : vector<8xf32> to vector<1x8xf32>
    %53 = vector.broadcast %52 : vector<1x8xf32> to vector<64x8xf32>
    %54 = arith.mulf %49, %53 : vector<64x8xf32>
    %c0_34 = arith.constant 0 : index
    %c0_35 = arith.constant 0 : index
    %55 = vector.load %arg8[%c0_34, %c0_35] : memref<1x8xf32, #tpu.memory_space<vmem>>, vector<1x8xf32>
    %56 = vector.shape_cast %55 : vector<1x8xf32> to vector<8xf32>
    %57 = vector.shape_cast %56 : vector<8xf32> to vector<1x8xf32>
    %58 = vector.broadcast %57 : vector<1x8xf32> to vector<64x8xf32>
    %59 = arith.addf %54, %58 : vector<64x8xf32>
    %60 = vector.extract_strided_slice %1 {offsets = [0, 0, 0], sizes = [8, 8, 4], strides = [1, 1, 1]} : vector<8x8x16xbf16> to vector<8x8x4xbf16>
    %61 = vector.shape_cast %60 : vector<8x8x4xbf16> to vector<64x4xbf16>
    %c0_36 = arith.constant 0 : index
    %c0_37 = arith.constant 0 : index
    %62 = vector.load %arg4[%c0_36, %c0_37] : memref<4x8xbf16, #tpu.memory_space<vmem>>, vector<4x8xbf16>
    %cst_38 = arith.constant dense<0.000000e+00> : vector<64x8xf32>
    %63 = tpu.matmul %61, %62, %cst_38 {dimension_numbers = #tpu.dot_dimension_numbers<[1], [0], [0], [1], [0, 0, 1, 1], [], []>} : vector<64x4xbf16>, vector<4x8xbf16>, vector<64x8xf32> -> vector<64x8xf32>
    %c0_39 = arith.constant 0 : index
    %c0_40 = arith.constant 0 : index
    %64 = vector.load %arg9[%c0_39, %c0_40] : memref<1x8xf32, #tpu.memory_space<vmem>>, vector<1x8xf32>
    %65 = vector.shape_cast %64 : vector<1x8xf32> to vector<8xf32>
    %66 = vector.shape_cast %65 : vector<8xf32> to vector<1x8xf32>
    %67 = vector.broadcast %66 : vector<1x8xf32> to vector<64x8xf32>
    %68 = arith.mulf %63, %67 : vector<64x8xf32>
    %c0_41 = arith.constant 0 : index
    %c0_42 = arith.constant 0 : index
    %69 = vector.load %arg10[%c0_41, %c0_42] : memref<1x8xf32, #tpu.memory_space<vmem>>, vector<1x8xf32>
    %70 = vector.shape_cast %69 : vector<1x8xf32> to vector<8xf32>
    %71 = vector.shape_cast %70 : vector<8xf32> to vector<1x8xf32>
    %72 = vector.broadcast %71 : vector<1x8xf32> to vector<64x8xf32>
    %73 = arith.addf %68, %72 : vector<64x8xf32>
    %74 = arith.addf %59, %73 : vector<64x8xf32>
    %cst_43 = arith.constant 0.000000e+00 : f32
    %75 = vector.broadcast %cst_43 : f32 to vector<64x8xf32>
    %76 = arith.maximumf %74, %75 : vector<64x8xf32>
    %77 = vector.shape_cast %76 : vector<64x8xf32> to vector<8x8x8xf32>
    %c0_44 = arith.constant 0 : index
    %c0_45 = arith.constant 0 : index
    %c0_46 = arith.constant 0 : index
    %c0_47 = arith.constant 0 : index
    %78 = vector.load %arg11[%c0_44, %c0_45, %c0_46, %c0_47] : memref<1x8x8x8xf32, #tpu.memory_space<vmem>>, vector<1x8x8x8xf32>
    %79 = vector.shape_cast %78 : vector<1x8x8x8xf32> to vector<8x8x8xf32>
    %80 = vector.shape_cast %77 : vector<8x8x8xf32> to vector<1x8x8x8xf32>
    tpu.vector_store %arg11[%c0_44, %c0_45, %c0_46, %c0_47], %80 {strides = array<i32>} : memref<1x8x8x8xf32, #tpu.memory_space<vmem>>, vector<1x8x8x8xf32>,
    return
  }
  func.func @transform_0(%arg0: i32) -> (i32, i32, i32, i32) {
    %c0_i32 = arith.constant 0 : i32
    %c0_i32_0 = arith.constant 0 : i32
    %c0_i32_1 = arith.constant 0 : i32
    %c0_i32_2 = arith.constant 0 : i32
    return %arg0, %c0_i32, %c0_i32_0, %c0_i32_1 : i32, i32, i32, i32
  }
  func.func @transform_1(%arg0: i32) -> (i32, i32) {
    %c0_i32 = arith.constant 0 : i32
    %c0_i32_0 = arith.constant 0 : i32
    %c0_i32_1 = arith.constant 0 : i32
    return %c0_i32, %c0_i32_0 : i32, i32
  }
  func.func @transform_2(%arg0: i32) -> (i32, i32) {
    %c0_i32 = arith.constant 0 : i32
    %c0_i32_0 = arith.constant 0 : i32
    %c0_i32_1 = arith.constant 0 : i32
    return %c0_i32, %c0_i32_0 : i32, i32
  }
  func.func @transform_3(%arg0: i32) -> (i32, i32) {
    %c0_i32 = arith.constant 0 : i32
    %c0_i32_0 = arith.constant 0 : i32
    %c0_i32_1 = arith.constant 0 : i32
    return %c0_i32, %c0_i32_0 : i32, i32
  }
  func.func @transform_4(%arg0: i32) -> (i32, i32) {
    %c0_i32 = arith.constant 0 : i32
    %c0_i32_0 = arith.constant 0 : i32
    %c0_i32_1 = arith.constant 0 : i32
    return %c0_i32, %c0_i32_0 : i32, i32
  }
  func.func @transform_5(%arg0: i32) -> (i32, i32) {
    %c0_i32 = arith.constant 0 : i32
    %c0_i32_0 = arith.constant 0 : i32
    %c0_i32_1 = arith.constant 0 : i32
    return %c0_i32, %c0_i32_0 : i32, i32
  }
  func.func @transform_6(%arg0: i32) -> (i32, i32) {
    %c0_i32 = arith.constant 0 : i32
    %c0_i32_0 = arith.constant 0 : i32
    %c0_i32_1 = arith.constant 0 : i32
    return %c0_i32, %c0_i32_0 : i32, i32
  }
  func.func @transform_7(%arg0: i32) -> (i32, i32) {
    %c0_i32 = arith.constant 0 : i32
    %c0_i32_0 = arith.constant 0 : i32
    %c0_i32_1 = arith.constant 0 : i32
    return %c0_i32, %c0_i32_0 : i32, i32
  }
  func.func @transform_8(%arg0: i32) -> (i32, i32) {
    %c0_i32 = arith.constant 0 : i32
    %c0_i32_0 = arith.constant 0 : i32
    %c0_i32_1 = arith.constant 0 : i32
    return %c0_i32, %c0_i32_0 : i32, i32
  }
  func.func @transform_9(%arg0: i32) -> (i32, i32) {
    %c0_i32 = arith.constant 0 : i32
    %c0_i32_0 = arith.constant 0 : i32
    %c0_i32_1 = arith.constant 0 : i32
    return %c0_i32, %c0_i32_0 : i32, i32
  }
  func.func @transform_10(%arg0: i32) -> (i32, i32, i32, i32) {
    %c0_i32 = arith.constant 0 : i32
    %c0_i32_0 = arith.constant 0 : i32
    %c0_i32_1 = arith.constant 0 : i32
    %c0_i32_2 = arith.constant 0 : i32
    return %arg0, %c0_i32, %c0_i32_0, %c0_i32_1 : i32, i32, i32, i32
  }
}

</mosaic_0001>

<bundles_post_ra>
// kernel: tpu_custom_call.1
= control target key start
LH: loop header
LB: loop body
LE: loop exit
PB: predicated region body
PF: predicated region fallthrough
CT: control target
= control target key end

     0   :  { %15 = vsyncpa [#allocation5], 0  ;;  %s3080_s0 = inlined_call_operand.vmem [shape: bf16[2,8,8,16], index: 0, kind: input, shape index: {}]   ;;  %s3081_s1 = inlined_call_operand.vmem [shape: bf16[64,8], index: 1, kind: input, shape index: {}]   ;;  %s3082_s2 = inlined_call_operand.vmem [shape: bf16[72,8], index: 2, kind: input, shape index: {}]   ;;  %s3083_s3 = inlined_call_operand.vmem [shape: bf16[4,8], index: 3, kind: input, shape index: {}]   ;;  %s3084_s4 = inlined_call_operand.vmem [shape: f32[1,8], index: 4, kind: input, shape index: {}]   ;;  %s3085_s5 = inlined_call_operand.vmem [shape: f32[1,8], index: 5, kind: input, shape index: {}]   ;;  %s3086_s6 = inlined_call_operand.vmem [shape: f32[1,8], index: 6, kind: input, shape index: {}]   ;;  %s3087_s7 = inlined_call_operand.vmem [shape: f32[1,8], index: 7, kind: input, shape index: {}]   ;;  %s3088_s8 = inlined_call_operand.vmem [shape: f32[1,8], index: 8, kind: input, shape index: {}]   ;;  %s3089_s9 = inlined_call_operand.vmem [shape: f32[1,8], index: 9, kind: input, shape index: {}]   ;;  %s3090_s10 = inlined_call_operand.hbm [shape: f32[2,8,8,8], index: 10, kind: output, shape index: {}]  }
   0x1   :  { %17 = vsyncpa [#allocation5 + $0x1], 0  ;;  %s2368_s13 = smov 0   ;;  %s2370_s14 = smov 0  }
   0x2   :  { %s2372_s15 = smov 0   ;;  %s2374_s16 = smov 0  }
   0x3 LB: > { %s2389_s17 = sadd.s32 4294967295, %s2300_s16   ;;  %s1963_s18 = sadd.s32 4294967294, %s2300_s16   ;;  %s2300_s16 = sphi %s2374_s16, %s3110_s16   ;;  %s2296_s15 = sphi %s2372_s15, %s3109_s15   ;;  %s2292_s14 = sphi %s2370_s14, %s3108_s14   ;;  %s2288_s13 = sphi %s2368_s13, %s3107_s13  }
   0x4   : > { %s2393_s19 = sadd.s32 1, %s2300_s16   ;;  %s245_s20 = sadd.s32 1, %s2296_s15 }
   0x5   : > { %s242_s21 = ssub.s32 %s2300_s16, %s2393_s19  ;;  %p255_p0 = scmp.ne.s32.totalorder %s2296_s15, %s2292_s14 }
   0x6   : > { %p243_p1 = scmp.eq.s32.totalorder %s242_s21, 0  ;;  %p256_p2 = scmp.eq.s32.totalorder %s2389_s17, 1 }
   0x7   : > { %p261_p3 = scmp.ne.s32.totalorder %s2292_s14, %s2288_s13  ;;  %p262_p4 = scmp.eq.s32.totalorder %s1963_s18, 1 }
   0x8   : > { %s2404_s22 = scalar_select %p243_p1, %s2296_s15, %s245_s20  }
   0x9   : > { %p2406_p5 = por %p256_p2, %p255_p0  ;;  %p2410_p6 = por %p262_p4, %p261_p3 }
   0xa   : > { %p1966_p7 = scmp.ge.s32.totalorder %s2300_s16, 1  ;;  %p315_p8 = scmp.lt.s32.totalorder %s2300_s16, 3 }
   0xc   : > { %p316_p9 = pnand %p1966_p7, %p315_p8 }
   0xd   : > { %vm367_vm0 = vcmask (!%p316_p9), 125952   ;;  %vm369_vm1 = vcmask (!%p316_p9), 122880   ;;  %vm370_vm2 = vsmask.f32 (!%p316_p9), 256  ;;  %v2302_v0 = vmov (!%p316_p9), 0   ;;  %p353_p10 = scmp.lt.s32.totalorder (!%p316_p9), %s2389_s17, 1 }
   0xe   : > { %319 = sbr.rel (%p316_p9) target bundleno = 901 (0x385), region = 60  ;;  %368 = vst.msk [vmem:[#allocation2] sm:$0xf] (!%p316_p9), %vm367_vm0, %v2302_v0  ;;  %vm2419_vm3 = vmand (!%p316_p9), %vm369_vm1, %vm370_vm2  ;;  %v372_v2 = vld [vmem:[#allocation2 + $0x4] sm:$0x1] (!%p316_p9)  ;;  %s2303_s30 = smov (!%p316_p9), 16  }
   0xf   : > { %375 = vst.msk [vmem:[#allocation2 + $0x8] sm:$0xf] (!%p316_p9), %vm367_vm0, %v2302_v0  ;;  %379 = vst.msk [vmem:[#allocation2 + $0x10] sm:$0xf] (!%p316_p9), %vm367_vm0, %v2302_v0  ;;  %v380_v3 = vld [vmem:[#allocation2 + $0x14] sm:$0x1] (!%p316_p9) }
  0x10   : > { %383 = vst.msk [vmem:[#allocation2 + $0x18] sm:$0xf] (!%p316_p9), %vm367_vm0, %v2302_v0  ;;  %387 = vst.msk [vmem:[#allocation2 + $0x20] sm:$0xf] (!%p316_p9), %vm367_vm0, %v2302_v0  ;;  %v373_v4 = vsel (!%p316_p9), %vm2419_vm3, 0, %v372_v2  ;;  %v381_v5 = vsel (!%p316_p9), %vm2419_vm3, 0, %v380_v3 }
  0x11   : > { %391 = vst.msk [vmem:[#allocation2 + $0x28] sm:$0xf] (!%p316_p9), %vm367_vm0, %v2302_v0  ;;  %395 = vst.msk [vmem:[#allocation2 + $0x30] sm:$0xf] (!%p316_p9), %vm367_vm0, %v2302_v0  ;;  %v376_v6 = vld [vmem:[#allocation2 + $0xc] sm:$0x1] (!%p316_p9) }
  0x12   : > { %399 = vst.msk [vmem:[#allocation2 + $0x38] sm:$0xf] (!%p316_p9), %vm367_vm0, %v2302_v0  ;;  %403 = vst.msk [vmem:[#allocation2 + $0x40] sm:$0xf] (!%p316_p9), %vm367_vm0, %v2302_v0  ;;  %v377_v7 = vsel (!%p316_p9), %vm2419_vm3, 0, %v376_v6  ;;  %s3091_s21 = smov (!%p316_p9), 32  }
  0x13   : > { %374 = vst [vmem:[#allocation2 + $0x4] sm:$0x1] (!%p316_p9), %v373_v4  ;;  %382 = vst [vmem:[#allocation2 + $0x14] sm:$0x1] (!%p316_p9), %v381_v5  ;;  %v384_v8 = vld [vmem:[#allocation2 + $0x1c] sm:$0x1] (!%p316_p9) }
  0x14   : > { %v388_v9 = vld [vmem:[#allocation2 + $0x24] sm:$0x1] (!%p316_p9)  ;;  %378 = vst [vmem:[#allocation2 + $0xc] sm:$0x1] (!%p316_p9), %v377_v7  ;;  %v385_v10 = vsel (!%p316_p9), %vm2419_vm3, 0, %v384_v8  ;;  %s2305_s11 = smov (!%p316_p9), 48  }
  0x15   : > { %s354_s25 = scalar_select %p353_p10, %s2389_s17, 1  ;;  %v389_v11 = vsel %vm2419_vm3, 0, %v388_v9  ;;  %v392_v12 = vld [vmem:[#allocation2 + $0x2c] sm:$0x1]  ;;  %386 = vst [vmem:[#allocation2 + $0x1c] sm:$0x1] %v385_v10 }
  0x16   : > { %390 = vst [vmem:[#allocation2 + $0x24] sm:$0x1] %v389_v11  ;;  %v393_v13 = vsel %vm2419_vm3, 0, %v392_v12  ;;  %v400_v14 = vld [vmem:[#allocation2 + $0x3c] sm:$0x1]  ;;  %vm721_vm6 = vcmask 130048  }
  0x17   : > { %s2058_s26 = sshll.u32 %s354_s25, 5  ;;  %v396_v15 = vld [vmem:[#allocation2 + $0x34] sm:$0x1]  ;;  %394 = vst [vmem:[#allocation2 + $0x2c] sm:$0x1] %v393_v13  ;;  %v401_v16 = vsel %vm2419_vm3, 0, %v400_v14 }
  0x18   : > { %s2456_s29 = scalar_lea.vmem %s3080_s0, %s2058_s26  ;;  %v397_v17 = vsel %vm2419_vm3, 0, %v396_v15  ;;  %v404_v18 = vld [vmem:[#allocation2 + $0x44] sm:$0x1]  ;;  %402 = vst [vmem:[#allocation2 + $0x3c] sm:$0x1] %v401_v16  ;;  %vm746_vm7 = vcmask 261120  }
  0x19   : > { %v360_v19 = vld [vmem:[%s2456_s29 + $0x4] sm:$0xf]  ;;  %v359_v20 = vld [vmem:[%s2456_s29] sm:$0xf]  ;;  %v362_v21 = vld [vmem:[%s2456_s29 + $0xc] sm:$0xf] }
  0x1a   : > { %398 = vst [vmem:[#allocation2 + $0x34] sm:$0x1] %v397_v17  ;;  %v2465_v22 = vld [vmem:[#allocation2] sm:$0xf]  ;;  %v416_v23 = vshrl.u32 %v360_v19, 16  ;;  %v419_v24 = vshll.u32 %v360_v19, 16 }
  0x1b   : > { %vm489_vm4 = vsmask.f32 7938  ;;  %v497_v25 = vld [vmem:[#allocation2 + $0x10] sm:$0xf]  ;;  %v408_v26 = vshrl.u32 %v359_v20, 16  ;;  %v411_v27 = vshll.u32 %v359_v20, 16 }
  0x1c   : > { %v432_v28 = vshrl.u32 %v362_v21, 16  ;;  %v540_v29 = vld [vmem:[#allocation2 + $0x4] sm:$0x1]  ;;  %v418_v30 = vrot.slane %v416_v23, 7  ;;  %v491_v31 = vld [vmem:[#allocation2 + $0x8] sm:$0xf]  ;;  %vm2472_vm5 = vmand %vm367_vm0, %vm489_vm4 }
  0x1d   : > { %v435_v32 = vshll.u32 %v362_v21, 16  ;;  %v405_v33 = vsel %vm2419_vm3, 0, %v404_v18  ;;  %v1970_v34 = vcombine.low %v2465_v22, %v540_v29  ;;  %v500_v36 = vld [vmem:[#allocation2 + $0x14] sm:$0x1]  ;;  %v410_v37 = vrot.slane %v408_v26, 7  ;;  %v2202_v26 = vld [vmem:[%s3081_s1] sm:$0xff]  }
  0x1e   : > { %v434_v38 = vrot.slane %v432_v28, 7  ;;  %v361_v39 = vld [vmem:[%s2456_s29 + $0x8] sm:$0xf]  ;;  %406 = vst [vmem:[#allocation2 + $0x44] sm:$0x1] %v405_v33  ;;  %v421_v40 = vor.u32 %v419_v24, %v418_v30  ;;  %v422_v41 = vrot.slane %v418_v30, 4  ;;  %2090 = vmatprep.subr.bf16.mxu0 %v2202_v26 }
  0x1f   : > { %v509_v42 = vld [vmem:[#allocation2 + $0x20] sm:$0xf]  ;;  %v424_v43 = vshrl.u32 %v361_v39, 16  ;;  %v427_v44 = vshll.u32 %v361_v39, 16  ;;  %v598_v45 = vshrl.u32 %v1970_v34, 16  ;;  %v600_v46 = vshll.u32 %v1970_v34, 16  ;;  %2091 = vmatpush3.bf16.msra.mxu0 %v2202_v26 }
  0x20   : > { %v413_v47 = vor.u32 %v411_v27, %v410_v37  ;;  %v414_v48 = vrot.slane %v410_v37, 4  ;;  %v494_v49 = vld [vmem:[#allocation2 + $0xc] sm:$0x1]  ;;  %v498_v50 = vsel %vm2472_vm5, %v421_v40, %v497_v25  ;;  %v501_v51 = vsel %vm2419_vm3, %v422_v41, %v500_v36  ;;  %v512_v54 = vld [vmem:[#allocation2 + $0x24] sm:$0x1]  ;;  %s3093_s12 = smov 8  }
  0x21   : > { %v437_v52 = vor.u32 %v435_v32, %v434_v38  ;;  %v438_v53 = vrot.slane %v434_v38, 4  ;;  %v602_v55 = vrot.slane %v600_v46, 1  ;;  %499 = vst [vmem:[#allocation2 + $0x10] sm:$0xf] %v498_v50  ;;  %502 = vst [vmem:[#allocation2 + $0x14] sm:$0x1] %v501_v51 }
  0x22   : > { %v492_v56 = vsel %vm2472_vm5, %v413_v47, %v491_v31  ;;  %v426_v57 = vrot.slane %v424_v43, 7  ;;  %v503_v58 = vld [vmem:[#allocation2 + $0x18] sm:$0xf]  ;;  %v495_v59 = vsel %vm2419_vm3, %v414_v48, %v494_v49  ;;  %v363_v60 = vld [vmem:[%s2456_s29 + $0x10] sm:$0xf]  ;;  %v2203_v32 = vld [vmem:[%s3081_s1 + $0x8] sm:$0xff]  }
  0x23   : > { %493 = vst [vmem:[#allocation2 + $0x8] sm:$0xf] %v492_v56  ;;  %v510_v61 = vsel %vm2472_vm5, %v437_v52, %v509_v42  ;;  %496 = vst [vmem:[#allocation2 + $0xc] sm:$0x1] %v495_v59  ;;  %v506_v62 = vld [vmem:[#allocation2 + $0x1c] sm:$0x1]  ;;  %v513_v63 = vsel %vm2419_vm3, %v438_v53, %v512_v54  ;;  %v603_v5 = vor.u32 %v602_v55, %v598_v45  ;;  %2092 = vmatprep.subr.bf16.mxu0 %v2203_v32 }
  0x24   : > { %v440_v2 = vshrl.u32 %v363_v60, 16  ;;  %v443_v3 = vshll.u32 %v363_v60, 16  ;;  %v365_v4 = vld [vmem:[%s2456_s29 + $0x18] sm:$0xf]  ;;  %511 = vst [vmem:[#allocation2 + $0x20] sm:$0xf] %v510_v61  ;;  %v429_v6 = vor.u32 %v427_v44, %v426_v57  ;;  %2093 = vmatpush3.bf16.msra.mxu0 %v2203_v32 }
  0x25   : > { %v430_v7 = vrot.slane %v426_v57, 4  ;;  %514 = vst [vmem:[#allocation2 + $0x24] sm:$0x1] %v513_v63  ;;  %v515_v8 = vld [vmem:[#allocation2 + $0x28] sm:$0xf]  ;;  %v456_v9 = vshrl.u32 %v365_v4, 16  ;;  %653 = vrot.lane.b32.xlu0 %v603_v5, %s2303_s30 }
  0x26   : > { %v442_v10 = vrot.slane %v440_v2, 7  ;;  %v518_v11 = vld [vmem:[#allocation2 + $0x2c] sm:$0x1]  ;;  %v459_v12 = vshll.u32 %v365_v4, 16  ;;  %v364_v13 = vld [vmem:[%s2456_s29 + $0x14] sm:$0xf]  ;;  %v504_v14 = vsel %vm2472_vm5, %v429_v6, %v503_v58 }
  0x27   : > { %v507_v15 = vsel %vm2419_vm3, %v430_v7, %v506_v62  ;;  %v458_v16 = vrot.slane %v456_v9, 7  ;;  %v527_v17 = vld [vmem:[#allocation2 + $0x38] sm:$0xf]  ;;  %v448_v18 = vshrl.u32 %v364_v13, 16  ;;  %v366_v19 = vld [vmem:[%s2456_s29 + $0x1c] sm:$0xf] }
  0x28   : > { %505 = vst [vmem:[#allocation2 + $0x18] sm:$0xf] %v504_v14  ;;  %508 = vst [vmem:[#allocation2 + $0x1c] sm:$0x1] %v507_v15  ;;  %v445_v20 = vor.u32 %v443_v3, %v442_v10  ;;  %v446_v21 = vrot.slane %v442_v10, 4  ;;  %v451_v24 = vshll.u32 %v364_v13, 16 }
  0x29   : > { %v530_v23 = vld [vmem:[#allocation2 + $0x3c] sm:$0x1]  ;;  %v464_v25 = vshrl.u32 %v366_v19, 16  ;;  %v461_v27 = vor.u32 %v459_v12, %v458_v16  ;;  %v462_v28 = vrot.slane %v458_v16, 4  ;;  %v450_v29 = vrot.slane %v448_v18, 7  ;;  %v2204_v6 = vld [vmem:[%s3081_s1 + $0x10] sm:$0xff]  }
  0x2a   : > { %v521_v30 = vld [vmem:[#allocation2 + $0x30] sm:$0xf]  ;;  %v524_v31 = vld [vmem:[#allocation2 + $0x34] sm:$0x1]  ;;  %v516_v36 = vsel %vm2472_vm5, %v445_v20, %v515_v8  ;;  %v519_v37 = vsel %vm2419_vm3, %v446_v21, %v518_v11  ;;  %v467_v39 = vshll.u32 %v366_v19, 16  ;;  %v2205_v11 = vld [vmem:[%s3081_s1 + $0x18] sm:$0xff]   ;;  %2094 = vmatprep.subr.bf16.mxu0 %v2204_v6 }
  0x2b   : > { %v2504_v33 = vld [vmem:[#allocation2 + $0x10] sm:$0xf]  ;;  %v544_v34 = vld [vmem:[#allocation2 + $0x14] sm:$0x1]  ;;  %v466_v38 = vrot.slane %v464_v25, 7  ;;  %v528_v44 = vsel %vm2472_vm5, %v461_v27, %v527_v17  ;;  %v531_v45 = vsel %vm2419_vm3, %v462_v28, %v530_v23  ;;  %v453_v50 = vor.u32 %v451_v24, %v450_v29  ;;  %2095 = vmatpush3.bf16.msra.mxu0 %v2204_v6  ;;  %s2307_s18 = smov 56  }
  0x2c   : > { %v1979_v40 = vcombine.low %v2504_v33, %v2504_v33  ;;  %v1972_v41 = vcombine.low %v2504_v33, %v544_v34  ;;  %v2513_v42 = vld [vmem:[#allocation2 + $0x8] sm:$0xf]  ;;  %v542_v43 = vld [vmem:[#allocation2 + $0xc] sm:$0x1]  ;;  %517 = vst [vmem:[#allocation2 + $0x28] sm:$0xf] %v516_v36  ;;  %2096 = vmatprep.subr.bf16.mxu0 %v2205_v11 }
  0x2d   : > { %520 = vst [vmem:[#allocation2 + $0x2c] sm:$0x1] %v519_v37  ;;  %v1978_v46 = vcombine.low %v2513_v42, %v2513_v42  ;;  %v2521_v47 = vld [vmem:[#allocation2 + $0x20] sm:$0xf]  ;;  %v1971_v48 = vcombine.low %v2513_v42, %v542_v43  ;;  %v548_v49 = vld [vmem:[#allocation2 + $0x24] sm:$0x1]  ;;  %v522_v58 = vsel %vm2472_vm5, %v453_v50, %v521_v30  ;;  %v469_v63 = vor.u32 %v467_v39, %v466_v38 }
  0x2e   : > { %529 = vst [vmem:[#allocation2 + $0x38] sm:$0xf] %v528_v44  ;;  %532 = vst [vmem:[#allocation2 + $0x3c] sm:$0x1] %v531_v45  ;;  %v454_v51 = vrot.slane %v450_v29, 4  ;;  %681 = vrot.lane.b32.xlu1 %v1979_v40, %s3091_s21  ;;  %v1981_v53 = vcombine.low %v2521_v47, %v2521_v47  ;;  %v612_v54 = vshrl.u32 %v1972_v41, 16  ;;  %v1974_v8 = vcombine.low %v2521_v47, %v548_v49 }
  0x2f   : > { %v533_v52 = vld [vmem:[#allocation2 + $0x40] sm:$0xf]  ;;  %v614_v55 = vshll.u32 %v1972_v41, 16  ;;  %679 = vrot.lane.b32.xlu0 %v1978_v46, %s3091_s21  ;;  %v605_v56 = vshrl.u32 %v1971_v48, 16  ;;  %v607_v57 = vshll.u32 %v1971_v48, 16  ;;  %v470_v9 = vrot.slane %v466_v38, 4  ;;  %2097 = vmatpush3.bf16.msra.mxu0 %v2205_v11 }
  0x30   : > { %v525_v59 = vsel %vm2419_vm3, %v454_v51, %v524_v31  ;;  %v2532_v60 = vld [vmem:[#allocation2 + $0x18] sm:$0xf]  ;;  %v546_v62 = vld [vmem:[#allocation2 + $0x1c] sm:$0x1]  ;;  %523 = vst [vmem:[#allocation2 + $0x30] sm:$0xf] %v522_v58  ;;  %v534_v10 = vsel %vm2472_vm5, %v469_v63, %v533_v52 }
  0x31   : > { %v616_v61 = vrot.slane %v614_v55, 1  ;;  %526 = vst [vmem:[#allocation2 + $0x34] sm:$0x1] %v525_v59  ;;  %v1980_v2 = vcombine.low %v2532_v60, %v2532_v60  ;;  %v609_v3 = vrot.slane %v607_v57, 1  ;;  %v1973_v4 = vcombine.low %v2532_v60, %v546_v62  ;;  %v536_v5 = vld [vmem:[#allocation2 + $0x44] sm:$0x1] }
  0x32   : > { %685 = vrot.lane.b32.xlu1 %v1981_v53, %s3091_s21  ;;  %535 = vst [vmem:[#allocation2 + $0x40] sm:$0xf] %v534_v10  ;;  %v537_v17 = vsel %vm2419_vm3, %v470_v9, %v536_v5  ;;  %v628_v18 = vshll.u32 %v1974_v8, 16  ;;  %v626_v26 = vshrl.u32 %v1974_v8, 16  ;;  %vm763_vm8 = vcmask 392192   ;;  %s2308_s28 = smov 24  }
  0x33   : > { %v617_v7 = vor.u32 %v616_v61, %v612_v54  ;;  %683 = vrot.lane.b32.xlu0 %v1980_v2, %s3091_s21  ;;  %v610_v12 = vor.u32 %v609_v3, %v605_v56  ;;  %v619_v13 = vshrl.u32 %v1973_v4, 16  ;;  %v621_v14 = vshll.u32 %v1973_v4, 16  ;;  %v2548_v15 = vld [vmem:[#allocation2 + $0x28] sm:$0xf]  ;;  %538 = vst [vmem:[#allocation2 + $0x44] sm:$0x1] %v537_v17 }
  0x34   : > { %v550_v16 = vld [vmem:[#allocation2 + $0x2c] sm:$0x1]  ;;  %v630_v27 = vrot.slane %v628_v18, 1  ;;  %v1982_v45 = vcombine.low %v2548_v15, %v2548_v15  ;;  %vm832_vm9 = vcmask 523264   ;;  %vm948_vm10 = vcmask 60416   ;;  %s2309_s20 = smov 40  }
  0x35   : > { %v623_v35 = vrot.slane %v621_v14, 1  ;;  %v1975_v19 = vcombine.low %v2548_v15, %v550_v16  ;;  %v2555_v21 = vld [vmem:[#allocation2 + $0x38] sm:$0xf]  ;;  %v554_v23 = vld [vmem:[#allocation2 + $0x3c] sm:$0x1]  ;;  %vm950_vm11 = vcmask 57344   ;;  %vm2691_vm12 = vmand %vm948_vm10, %vm489_vm4 }
  0x36   : > { %657 = vrot.lane.b32.xlu1 %v617_v7, %s2303_s30  ;;  %v1977_v29 = vcombine.low %v2555_v21, %v554_v23  ;;  %v631_v31 = vor.u32 %v630_v27, %v626_v26  ;;  %v1984_v51 = vcombine.low %v2555_v21, %v2555_v21  ;;  %956 = vst.msk [vmem:[#allocation3 + $0x18] sm:$0xf] %vm948_vm10, %v2302_v0  ;;  %949 = vst.msk [vmem:[#allocation3] sm:$0xf] %vm948_vm10, %v2302_v0  ;;  %s2310_s25 = smov 64   ;;  %vm1631_vm14 = vcmask 1043456  }
  0x37   : > { %655 = vrot.lane.b32.xlu0 %v610_v12, %s2303_s30  ;;  %v624_v20 = vor.u32 %v623_v35, %v619_v13  ;;  %v2557_v24 = vld [vmem:[#allocation2 + $0x30] sm:$0xf]  ;;  %v635_v28 = vshll.u32 %v1975_v19, 16  ;;  %v633_v32 = vshrl.u32 %v1975_v19, 16  ;;  %957 = vst.msk [vmem:[#allocation3 + $0x1c] sm:$0x1] %vm950_vm11, %v2302_v0  ;;  %vm2697_vm13 = vmand %vm950_vm11, %vm370_vm2 }
  0x38   : > { %v552_v25 = vld [vmem:[#allocation2 + $0x34] sm:$0x1]  ;;  %v649_v36 = vshll.u32 %v1977_v29, 16  ;;  %v647_v40 = vshrl.u32 %v1977_v29, 16  ;;  %v1983_v49 = vcombine.low %v2557_v24, %v2557_v24  ;;  %951 = vst.msk [vmem:[#allocation3 + $0x4] sm:$0x1] %vm950_vm11, %v2302_v0 }
  0x39   : > { %v1976_v1 = vcombine.low %v2557_v24, %v552_v25  ;;  %v637_v34 = vrot.slane %v635_v28, 1  ;;  %v555_v48 = vld [vmem:[#allocation2 + $0x40] sm:$0xf]  ;;  %952 = vst.msk [vmem:[#allocation3 + $0x8] sm:$0xf] %vm948_vm10, %v2302_v0  ;;  %vm1764_vm15 = vcmask 1041408  }
  0x3a   : > { %659 = vrot.lane.b32.xlu1 %v624_v20, %s2303_s30  ;;  %v651_v41 = vrot.slane %v649_v36, 1  ;;  %v556_v46 = vld [vmem:[#allocation2 + $0x44] sm:$0x1]  ;;  %v1985_v52 = vcombine.low %v555_v48, %v555_v48  ;;  %953 = vst.msk [vmem:[#allocation3 + $0xc] sm:$0x1] %vm950_vm11, %v2302_v0  ;;  %vm1751_vm0 = vcmask 31744  }
  0x3b   : > { %705 = vrot.lane.b32.xlu0 %v610_v12, %s2305_s11  ;;  %v642_v30 = vshll.u32 %v1976_v1, 16  ;;  %v640_v37 = vshrl.u32 %v1976_v1, 16  ;;  %v638_v39 = vor.u32 %v637_v34, %v633_v32  ;;  %v1986_v50 = vcombine.low %v555_v48, %v556_v46  ;;  %954 = vst.msk [vmem:[#allocation3 + $0x10] sm:$0xf] %vm948_vm10, %v2302_v0  ;;  %958 = vst.msk [vmem:[#allocation3 + $0x20] sm:$0xf] %vm948_vm10, %v2302_v0 }
  0x3c   : > { %v652_v44 = vor.u32 %v651_v41, %v647_v40  ;;  %955 = vst.msk [vmem:[#allocation3 + $0x14] sm:$0x1] %vm950_vm11, %v2302_v0  ;;  %959 = vst.msk [vmem:[#allocation3 + $0x24] sm:$0x1] %vm950_vm11, %v2302_v0  ;;  %vm1422_vm1 = vcmask 64512   ;;  %vm1463_vm2 = vcmask 195584  }
  0x3d   : > { %v644_v38 = vrot.slane %v642_v30, 1  ;;  %v701_v53 = vshll.u32 %v1986_v50, 16  ;;  %v699_v54 = vshrl.u32 %v1986_v50, 16  ;;  %960 = vst.msk [vmem:[#allocation3 + $0x28] sm:$0xf] %vm948_vm10, %v2302_v0  ;;  %vm1496_vm3 = vcmask 326656  }
  0x3e   : > { %707 = vrot.lane.b32.xlu1 %v617_v7, %s2305_s11  ;;  %961 = vst.msk [vmem:[#allocation3 + $0x2c] sm:$0x1] %vm950_vm11, %v2302_v0  ;;  %963 = vst.msk [vmem:[#allocation3 + $0x34] sm:$0x1] %vm950_vm11, %v2302_v0  ;;  %vm1529_vm4 = vcmask 457728   ;;  %vm1618_vm5 = vcmask 588800  }
  0x3f   : > { %709 = vrot.lane.b32.xlu0 %v624_v20, %s2305_s11  ;;  %v645_v43 = vor.u32 %v644_v38, %v640_v37  ;;  %v703_v55 = vrot.slane %v701_v53, 1  ;;  %962 = vst.msk [vmem:[#allocation3 + $0x30] sm:$0xf] %vm948_vm10, %v2302_v0  ;;  %964 = vst.msk [vmem:[#allocation3 + $0x38] sm:$0xf] %vm948_vm10, %v2302_v0  ;;  %s350_s26 = sand.u32 1, %s2292_s14  }
  0x40   : > { %965 = vst.msk [vmem:[#allocation3 + $0x3c] sm:$0x1] %vm950_vm11, %v2302_v0  ;;  %967 = vst.msk [vmem:[#allocation3 + $0x44] sm:$0x1] %vm950_vm11, %v2302_v0  ;;  %v1136_v46 = vld [vmem:[#allocation3 + $0x4] sm:$0x1] }
  0x41   : > { %v704_v56 = vor.u32 %v703_v55, %v699_v54  ;;  %966 = vst.msk [vmem:[#allocation3 + $0x40] sm:$0xf] %vm948_vm10, %v2302_v0  ;;  %968 = vst.msk [vmem:[#allocation3 + $0x48] sm:$0xf] %vm948_vm10, %v2302_v0 }
  0x42   : > { %711 = vrot.lane.b32.xlu1 %v631_v31, %s2305_s11  ;;  %969 = vst.msk [vmem:[#allocation3 + $0x4c] sm:$0x1] %vm950_vm11, %v2302_v0 }
  0x43   : > { %661 = vrot.lane.b32.xlu0 %v631_v31, %s2303_s30 }
  0x46   : > { %663 = vrot.lane.b32.xlu1 %v638_v39, %s2303_s30 }
  0x47   : > { %665 = vrot.lane.b32.xlu0 %v645_v43, %s2303_s30 }
  0x48   : > { %v1153_v53 = vld [vmem:[#allocation3 + $0x48] sm:$0xf] }
  0x49   : > { %v1154_v54 = vld [vmem:[#allocation3 + $0x4c] sm:$0x1] }
  0x4a   : > { %667 = vrot.lane.b32.xlu1 %v652_v44, %s2303_s30  ;;  %v2663_v55 = vcombine.low %v1153_v53, %v1154_v54 }
  0x4b   : > { %687 = vrot.lane.b32.xlu0 %v1982_v45, %s3091_s21 }
  0x4e   : > { %689 = vrot.lane.b32.xlu1 %v1983_v49, %s3091_s21 }
  0x4f   : > { %691 = vrot.lane.b32.xlu0 %v1984_v51, %s3091_s21 }
  0x52   : > { %693 = vrot.lane.b32.xlu1 %v1985_v52, %s3091_s21 }
  0x53   : > { %713 = vrot.lane.b32.xlu0 %v638_v39, %s2305_s11 }
  0x56   : > { %715 = vrot.lane.b32.xlu1 %v645_v43, %s2305_s11 }
  0x57   : > { %717 = vrot.lane.b32.xlu0 %v652_v44, %s2305_s11 }
  0x5a   : > { %719 = vrot.lane.b32.xlu1 %v704_v56, %s2305_s11  ;;  %v2026_v56 = vcombine.low %v1153_v53, %v1153_v53 }
  0x5e   : > { %1377 = vrot.lane.b32.xlu1 %v2026_v56, %s2305_s11 }
  0x97   : > { %v654_v57 = vpop.permute.xlu0 %653 }
  0x98   : > { %v724_v4 = vsel %vm721_vm6, %v2465_v22, %v654_v57  ;;  %v1385_v57 = vshll.u32 %v2663_v55, 16 }
  0xa0   : > { %v682_v58 = vpop.permute.xlu1 %681 }
  0xa1   : > { %v680_v59 = vpop.permute.xlu0 %679 }
  0xa2   : > { %v748_v7 = vsel %vm746_vm7, %v724_v4, %v680_v59  ;;  %v1387_v59 = vrot.slane %v1385_v57, 1 }
  0xa4   : > { %v686_v61 = vpop.permute.xlu1 %685 }
  0xa5   : > { %v684_v62 = vpop.permute.xlu0 %683 }
  0xa8   : > { %v658_v63 = vpop.permute.xlu1 %657 }
  0xa9   : > { %v656_v2 = vpop.permute.xlu0 %655  ;;  %v730_v10 = vsel %vm721_vm6, %v2504_v33, %v658_v63 }
  0xaa   : > { %v727_v5 = vsel %vm721_vm6, %v2513_v42, %v656_v2  ;;  %v752_v14 = vsel %vm746_vm7, %v730_v10, %v684_v62  ;;  %v2674_v62 = vld [vmem:[%s3084_s4] ss:$0 sm:$0xff] }
  0xab   : > { %v750_v9 = vsel %vm746_vm7, %v727_v5, %v682_v58  ;;  %v1383_v58 = vshrl.u32 %v2663_v55, 16  ;;  %v2679_v2 = vld [vmem:[%s3085_s5] ss:$0 sm:$0xff] }
  0xac   : > { %v660_v3 = vpop.permute.xlu1 %659 }
  0xad   : > { %v706_v6 = vpop.permute.xlu0 %705  ;;  %v733_v11 = vsel %vm721_vm6, %v2532_v60, %v660_v3 }
  0xae   : > { %v765_v22 = vsel %vm763_vm8, %v748_v7, %v706_v6  ;;  %v754_v16 = vsel %vm746_vm7, %v733_v11, %v686_v61  ;;  %v1388_v61 = vor.u32 %v1387_v59, %v1383_v58 }
  0xb0   : > { %v708_v8 = vpop.permute.xlu1 %707  ;;  %1403 = vrot.lane.b32.xlu1 %v1388_v61, %s2307_s18 }
  0xb1   : > { %v767_v12 = vsel %vm763_vm8, %v750_v9, %v708_v8  ;;  %v710_v13 = vpop.permute.xlu0 %709 }
  0xb2   : > { %v1987_v42 = vcombine.low %v765_v22, %v767_v12  ;;  %v769_v35 = vsel %vm763_vm8, %v752_v14, %v710_v13 }
  0xb4   : > { %v712_v17 = vpop.permute.xlu1 %711  ;;  %2098 = vmatprep.mubr.msk.bf16.mxu0 %vm832_vm9, %v1987_v42 }
  0xb5   : > { %v771_v33 = vsel %vm763_vm8, %v754_v16, %v712_v17  ;;  %v662_v18 = vpop.permute.xlu0 %661 }
  0xb6   : > { %v1988_v19 = vcombine.low %v769_v35, %v771_v33  ;;  %v736_v26 = vsel %vm721_vm6, %v2521_v47, %v662_v18 }
  0xb8   : > { %2099 = vmatmul.mubr.msk.bf16.vlgmr.msra.gmra.mrb[0].mxu0 %vm832_vm9, %v1988_v19  ;;  %v664_v60 = vpop.permute.xlu1 %663  ;;  %v1099_v19 = vld [vmem:[#allocation3 + $0x18] sm:$0xf] }
  0xb9   : > { %v666_v20 = vpop.permute.xlu0 %665  ;;  %v739_v28 = vsel %vm721_vm6, %v2548_v15, %v664_v60  ;;  %v1102_v60 = vld [vmem:[#allocation3 + $0x1c] sm:$0x1] }
  0xba   : > { %v742_v31 = vsel %vm721_vm6, %v2557_v24, %v666_v20 }
  0xbc   : > { %v668_v23 = vpop.permute.xlu1 %667 }
  0xbd   : > { %v688_v25 = vpop.permute.xlu0 %687  ;;  %v745_v36 = vsel %vm721_vm6, %v2555_v21, %v668_v23  ;;  %v2660_v21 = vld [vmem:[#allocation3] sm:$0xf] }
  0xbe   : > { %v756_v29 = vsel %vm746_vm7, %v736_v26, %v688_v25  ;;  %v2009_v48 = vcombine.low %v2660_v21, %v1136_v46 }
  0xc0   : > { %v690_v1 = vpop.permute.xlu1 %689  ;;  %v1198_v49 = vshll.u32 %v2009_v48, 16  ;;  %v1196_v50 = vshrl.u32 %v2009_v48, 16  ;;  %v1267_v0 = vrot.slane %v2009_v48, 1 }
  0xc1   : > { %v692_v27 = vpop.permute.xlu0 %691  ;;  %v758_v34 = vsel %vm746_vm7, %v739_v28, %v690_v1 }
  0xc2   : > { %v760_v47 = vsel %vm746_vm7, %v742_v31, %v692_v27  ;;  %v1200_v51 = vrot.slane %v1198_v49, 1  ;;  %v1085_v27 = vld [vmem:[#allocation3 + $0x8] sm:$0xf]  ;;  %v1093_v49 = vld [vmem:[#allocation3 + $0x10] sm:$0xf] }
  0xc4   : > { %v694_v30 = vpop.permute.xlu1 %693  ;;  %v1201_v52 = vor.u32 %v1200_v51, %v1196_v50  ;;  %v1096_v50 = vld [vmem:[#allocation3 + $0x14] sm:$0x1] }
  0xc5   : > { %v714_v32 = vpop.permute.xlu0 %713  ;;  %v762_v40 = vsel %vm746_vm7, %v745_v36, %v694_v30 }
  0xc6   : > { %v773_v37 = vsel %vm763_vm8, %v756_v29, %v714_v32  ;;  %1251 = vrot.lane.b32.xlu0 %v1201_v52, %s3093_s12  ;;  %v1090_v32 = vld [vmem:[#allocation3 + $0xc] sm:$0x1] }
  0xc8   : > { %v716_v38 = vpop.permute.xlu1 %715 }
  0xc9   : > { %v775_v39 = vsel %vm763_vm8, %v758_v34, %v716_v38  ;;  %v718_v15 = vpop.permute.xlu0 %717 }
  0xca   : > { %v1989_v41 = vcombine.low %v773_v37, %v775_v39  ;;  %v777_v43 = vsel %vm763_vm8, %v760_v47, %v718_v15  ;;  %1275 = vrot.lane.b32.xlu0 %v1267_v0, %s2303_s30  ;;  %v1105_v39 = vld [vmem:[#allocation3 + $0x20] sm:$0xf] }
  0xcc   : > { %v720_v24 = vpop.permute.xlu1 %719  ;;  %2102 = vmatprep.mubr.msk.bf16.mxu0 %vm832_vm9, %v1989_v41  ;;  %v1108_v41 = vld [vmem:[#allocation3 + $0x24] sm:$0x1] }
  0xcd   : > { %v779_v44 = vsel %vm763_vm8, %v762_v40, %v720_v24 }
  0xce   : > { %v1990_v45 = vcombine.low %v777_v43, %v779_v44 }
  0xd0   : > { %2103 = vmatmul.mubr.msk.bf16.gmra.mrb[4].mxu0 %vm832_vm9, %v1990_v45 }
 0x18b   : > { %v2100_v63 = vpop.f32.mrb[0].mxu0 }
 0x18c   : > { %v919_v3 = vmul.f32 %v2100_v63, %v2674_v62  ;;  %v879_v4 = vpop.f32.mrb[1].mxu0 }
 0x18d   : > { %v917_v5 = vmul.f32 %v2674_v62, %v879_v4  ;;  %v2101_v6 = vpop.f32.mrb[2].mxu0 }
 0x18e   : > { %v934_v7 = vadd.f32 %v2679_v2, %v919_v3  ;;  %v920_v8 = vmul.f32 %v2101_v6, %v2674_v62  ;;  %v882_v9 = vpop.f32.mrb[3].mxu0 }
 0x18f   : > { %v932_v10 = vadd.f32 %v2679_v2, %v917_v5  ;;  %v918_v11 = vmul.f32 %v2674_v62, %v882_v9 }
 0x190   : > { %v942_v22 = vmax.f32 %v934_v7, 0.0  ;;  %v935_v12 = vadd.f32 %v2679_v2, %v920_v8 }
 0x191   : > { %v940_v13 = vmax.f32 %v932_v10, 0.0  ;;  %v933_v42 = vadd.f32 %v2679_v2, %v918_v11 }
 0x192   : > { %v2061_v14 = vpack.c.bf16 %v942_v22, %v942_v22  ;;  %v943_v16 = vmax.f32 %v935_v12, 0.0 }
 0x193   : > { %v2059_v17 = vpack.c.bf16 %v940_v13, %v940_v13  ;;  %v941_v35 = vmax.f32 %v933_v42, 0.0 }
 0x194   : > { %v1019_v33 = vshrl.u32 %v2061_v14, 16  ;;  %v2062_v18 = vpack.c.bf16 %v943_v16, %v943_v16  ;;  %v1022_v1 = vshll.u32 %v2061_v14, 16 }
 0x195   : > { %v1003_v20 = vshrl.u32 %v2059_v17, 16  ;;  %v2060_v23 = vpack.c.bf16 %v941_v35, %v941_v35  ;;  %v1006_v31 = vshll.u32 %v2059_v17, 16 }
 0x196   : > { %v1021_v25 = vrot.slane %v1019_v33, 7  ;;  %v1027_v28 = vshrl.u32 %v2062_v18, 16  ;;  %v1030_v38 = vshll.u32 %v2062_v18, 16 }
 0x197   : > { %v1005_v30 = vrot.slane %v1003_v20, 7  ;;  %v1011_v34 = vshrl.u32 %v2060_v23, 16  ;;  %v1014_v24 = vshll.u32 %v2060_v23, 16 }
 0x198   : > { %v1024_v36 = vor.u32 %v1022_v1, %v1021_v25  ;;  %v1025_v37 = vrot.slane %v1021_v25, 4  ;;  %v1029_v47 = vrot.slane %v1027_v28, 7 }
 0x199   : > { %v1008_v15 = vor.u32 %v1006_v31, %v1005_v30  ;;  %v1009_v40 = vrot.slane %v1005_v30, 4  ;;  %v1013_v43 = vrot.slane %v1011_v34, 7  ;;  %v1123_v30 = vld [vmem:[#allocation3 + $0x38] sm:$0xf] }
 0x19a   : > { %v1100_v44 = vsel %vm2691_vm12, %v1024_v36, %v1099_v19  ;;  %v1103_v45 = vsel %vm2697_vm13, %v1025_v37, %v1102_v60  ;;  %v1032_v46 = vor.u32 %v1030_v38, %v1029_v47  ;;  %v1033_v48 = vrot.slane %v1029_v47, 4  ;;  %v1126_v37 = vld [vmem:[#allocation3 + $0x3c] sm:$0x1] }
 0x19b   : > { %1101 = vst [vmem:[#allocation3 + $0x18] sm:$0xf] %v1100_v44  ;;  %1104 = vst [vmem:[#allocation3 + $0x1c] sm:$0x1] %v1103_v45  ;;  %v1086_v51 = vsel %vm2691_vm12, %v1008_v15, %v1085_v27  ;;  %v1091_v52 = vsel %vm2697_vm13, %v1009_v40, %v1090_v32  ;;  %v1016_v53 = vor.u32 %v1014_v24, %v1013_v43  ;;  %v1017_v54 = vrot.slane %v1013_v43, 4 }
 0x19c   : > { %1087 = vst [vmem:[#allocation3 + $0x8] sm:$0xf] %v1086_v51  ;;  %1092 = vst [vmem:[#allocation3 + $0xc] sm:$0x1] %v1091_v52  ;;  %v1106_v56 = vsel %vm2691_vm12, %v1032_v46, %v1105_v39  ;;  %v1109_v57 = vsel %vm2697_vm13, %v1033_v48, %v1108_v41  ;;  %v1111_v15 = vld [vmem:[#allocation3 + $0x28] sm:$0xf] }
 0x19d   : > { %1107 = vst [vmem:[#allocation3 + $0x20] sm:$0xf] %v1106_v56  ;;  %1110 = vst [vmem:[#allocation3 + $0x24] sm:$0x1] %v1109_v57  ;;  %v1094_v0 = vsel %vm2691_vm12, %v1016_v53, %v1093_v49  ;;  %v1097_v58 = vsel %vm2697_vm13, %v1017_v54, %v1096_v50  ;;  %v1114_v44 = vld [vmem:[#allocation3 + $0x2c] sm:$0x1] }
 0x19e   : > { %1095 = vst [vmem:[#allocation3 + $0x10] sm:$0xf] %v1094_v0  ;;  %1098 = vst [vmem:[#allocation3 + $0x14] sm:$0x1] %v1097_v58  ;;  %v1129_v46 = vld [vmem:[#allocation3 + $0x40] sm:$0xf] }
 0x19f   : > { %v1132_v50 = vld [vmem:[#allocation3 + $0x44] sm:$0x1]  ;;  %v1117_v0 = vld [vmem:[#allocation3 + $0x30] sm:$0xf]  ;;  %v1120_v58 = vld [vmem:[#allocation3 + $0x34] sm:$0x1] }
 0x1a2   : > { %v2717_v59 = vld [vmem:[#allocation3 + $0x18] sm:$0xf]  ;;  %v1142_v61 = vld [vmem:[#allocation3 + $0x1c] sm:$0x1] }
 0x1a3   : > { %v2019_v63 = vcombine.low %v2717_v59, %v2717_v59  ;;  %v2104_v3 = vpop.f32.mrb[4].mxu0  ;;  %v2722_v4 = vcombine.low %v2717_v59, %v1142_v61  ;;  %v2725_v7 = vld [vmem:[#allocation3 + $0x8] sm:$0xf]  ;;  %v1138_v20 = vld [vmem:[#allocation3 + $0xc] sm:$0x1] }
 0x1a4   : > { %v923_v5 = vmul.f32 %v2104_v3, %v2674_v62  ;;  %v895_v6 = vpop.f32.mrb[5].mxu0  ;;  %v2017_v42 = vcombine.low %v2725_v7, %v2725_v7  ;;  %v2738_v35 = vld [vmem:[#allocation3 + $0x20] sm:$0xf] }
 0x1a5   : > { %1365 = vrot.lane.b32.xlu1 %v2019_v63, %s2305_s11  ;;  %1305 = vrot.lane.b32.xlu0 %v2019_v63, %s2308_s28  ;;  %v921_v8 = vmul.f32 %v2674_v62, %v895_v6  ;;  %v2105_v9 = vpop.f32.mrb[6].mxu0  ;;  %v1270_v13 = vrot.slane %v2722_v4, 1 }
 0x1a6   : > { %v938_v10 = vadd.f32 %v2679_v2, %v923_v5  ;;  %v924_v11 = vmul.f32 %v2105_v9, %v2674_v62  ;;  %v898_v22 = vpop.f32.mrb[7].mxu0  ;;  %v2765_v9 = vld [vmem:[#allocation3 + $0x10] sm:$0xf] }
 0x1a7   : > { %v936_v12 = vadd.f32 %v2679_v2, %v921_v8  ;;  %v922_v14 = vmul.f32 %v2674_v62, %v898_v22  ;;  %v2020_v62 = vcombine.low %v2738_v35, %v2738_v35 }
 0x1a8   : > { %v946_v16 = vmax.f32 %v938_v10, 0.0  ;;  %v939_v17 = vadd.f32 %v2679_v2, %v924_v11  ;;  %v1144_v10 = vld [vmem:[#allocation3 + $0x24] sm:$0x1] }
 0x1a9   : > { %v944_v33 = vmax.f32 %v936_v12, 0.0  ;;  %1281 = vrot.lane.b32.xlu1 %v1270_v13, %s2303_s30  ;;  %1301 = vrot.lane.b32.xlu0 %v2017_v42, %s2308_s28  ;;  %v937_v18 = vadd.f32 %v2679_v2, %v922_v14  ;;  %v2748_v2 = vcombine.low %v2725_v7, %v1138_v20  ;;  %v2018_v12 = vcombine.low %v2765_v9, %v2765_v9  ;;  %v1140_v42 = vld [vmem:[#allocation3 + $0x14] sm:$0x1] }
 0x1aa   : > { %v2065_v19 = vpack.c.bf16 %v946_v16, %v946_v16  ;;  %v947_v60 = vmax.f32 %v939_v17, 0.0  ;;  %v2011_v29 = vcombine.low %v2765_v9, %v1140_v42  ;;  %v1219_v14 = vshll.u32 %v2722_v4, 16 }
 0x1ab   : > { %v2063_v23 = vpack.c.bf16 %v944_v33, %v944_v33  ;;  %v945_v25 = vmax.f32 %v937_v18, 0.0  ;;  %v1268_v52 = vrot.slane %v2748_v2, 1  ;;  %v1217_v33 = vshrl.u32 %v2722_v4, 16 }
 0x1ac   : > { %v1051_v1 = vshrl.u32 %v2065_v19, 16  ;;  %v1054_v27 = vshll.u32 %v2065_v19, 16  ;;  %v2066_v28 = vpack.c.bf16 %v947_v60, %v947_v60  ;;  %v1269_v16 = vrot.slane %v2011_v29, 1 }
 0x1ad   : > { %v1035_v31 = vshrl.u32 %v2063_v23, 16  ;;  %v1038_v32 = vshll.u32 %v2063_v23, 16  ;;  %v2064_v34 = vpack.c.bf16 %v945_v25, %v945_v25  ;;  %1348 = vrot.lane.b32.xlu0 %v1270_v13, %s2309_s20  ;;  %1307 = vrot.lane.b32.xlu1 %v2020_v62, %s2308_s28  ;;  %v1221_v17 = vrot.slane %v1219_v14, 1 }
 0x1ae   : > { %v1053_v36 = vrot.slane %v1051_v1, 7  ;;  %v1059_v47 = vshrl.u32 %v2066_v28, 16  ;;  %v1062_v38 = vshll.u32 %v2066_v28, 16  ;;  %v1205_v19 = vshll.u32 %v2748_v2, 16 }
 0x1af   : > { %v1037_v39 = vrot.slane %v1035_v31, 7  ;;  %v1043_v40 = vshrl.u32 %v2064_v34, 16  ;;  %v1046_v41 = vshll.u32 %v2064_v34, 16  ;;  %v1222_v18 = vor.u32 %v1221_v17, %v1217_v33 }
 0x1b0   : > { %v1056_v43 = vor.u32 %v1054_v27, %v1053_v36  ;;  %v1057_v24 = vrot.slane %v1053_v36, 4  ;;  %v1061_v45 = vrot.slane %v1059_v47, 7  ;;  %v1207_v60 = vrot.slane %v1205_v19, 1 }
 0x1b1   : > { %v1040_v48 = vor.u32 %v1038_v32, %v1037_v39  ;;  %v1041_v49 = vrot.slane %v1037_v39, 4  ;;  %v1045_v51 = vrot.slane %v1043_v40, 7  ;;  %1367 = vrot.lane.b32.xlu0 %v2020_v62, %s2305_s11  ;;  %1408 = vrot.lane.b32.xlu1 %v1270_v13, %s2310_s25  ;;  %v2013_v13 = vcombine.low %v2738_v35, %v1144_v10 }
 0x1b2   : > { %v1124_v53 = vsel %vm2691_vm12, %v1056_v43, %v1123_v30  ;;  %v1127_v54 = vsel %vm2697_vm13, %v1057_v24, %v1126_v37  ;;  %v1064_v56 = vor.u32 %v1062_v38, %v1061_v45  ;;  %v1065_v57 = vrot.slane %v1061_v45, 4  ;;  %v2225_v24 = vld [vmem:[%s3082_s2] sm:$0xff]  }
 0x1b3   : > { %1125 = vst [vmem:[#allocation3 + $0x38] sm:$0xf] %v1124_v53  ;;  %1128 = vst [vmem:[#allocation3 + $0x3c] sm:$0x1] %v1127_v54  ;;  %v1112_v61 = vsel %vm2691_vm12, %v1040_v48, %v1111_v15  ;;  %v1115_v63 = vsel %vm2697_vm13, %v1041_v49, %v1114_v44  ;;  %v1048_v3 = vor.u32 %v1046_v41, %v1045_v51  ;;  %v1049_v5 = vrot.slane %v1045_v51, 4  ;;  %v2226_v44 = vld [vmem:[%s3082_s2 + $0x8] sm:$0xff]  }
 0x1b4   : > { %1113 = vst [vmem:[#allocation3 + $0x28] sm:$0xf] %v1112_v61  ;;  %1116 = vst [vmem:[#allocation3 + $0x2c] sm:$0x1] %v1115_v63  ;;  %v1130_v6 = vsel %vm2691_vm12, %v1064_v56, %v1129_v46  ;;  %v1133_v8 = vsel %vm2697_vm13, %v1065_v57, %v1132_v50  ;;  %v1271_v26 = vrot.slane %v2013_v13, 1  ;;  %v1226_v20 = vshll.u32 %v2013_v13, 16  ;;  %2106 = vmatprep.subr.bf16.mxu1 %v2225_v24 }
 0x1b5   : > { %1131 = vst [vmem:[#allocation3 + $0x40] sm:$0xf] %v1130_v6  ;;  %1134 = vst [vmem:[#allocation3 + $0x44] sm:$0x1] %v1133_v8  ;;  %v1118_v11 = vsel %vm2691_vm12, %v1048_v3, %v1117_v0  ;;  %v1121_v22 = vsel %vm2697_vm13, %v1049_v5, %v1120_v58  ;;  %1344 = vrot.lane.b32.xlu0 %v1268_v52, %s2309_s20  ;;  %1277 = vrot.lane.b32.xlu1 %v1268_v52, %s2303_s30  ;;  %v1203_v23 = vshrl.u32 %v2748_v2, 16  ;;  %v2227_v50 = vld [vmem:[%s3082_s2 + $0x10] sm:$0xff]  }
 0x1b6   : > { %1119 = vst [vmem:[#allocation3 + $0x30] sm:$0xf] %v1118_v11  ;;  %1122 = vst [vmem:[#allocation3 + $0x34] sm:$0x1] %v1121_v22  ;;  %v1228_v62 = vrot.slane %v1226_v20, 1  ;;  %v1224_v4 = vshrl.u32 %v2013_v13, 16  ;;  %2107 = vmatpush3.bf16.msra.mxu1 %v2225_v24 }
 0x1b7   : > { %v1208_v25 = vor.u32 %v1207_v60, %v1203_v23  ;;  %v1212_v27 = vshll.u32 %v2011_v29, 16  ;;  %v1210_v32 = vshrl.u32 %v2011_v29, 16  ;;  %2108 = vmatprep.subr.bf16.mxu1 %v2226_v44  ;;  %v2228_v54 = vld [vmem:[%s3082_s2 + $0x18] sm:$0xff]   ;;  %v2229_v61 = vld [vmem:[%s3082_s2 + $0x20] ss:$0 sps:$4 sm:$0xff]   ;;  %v2884_v60 = vpop.permute.xlu1 %1377 }
 0x1b8   : > { %v1229_v1 = vor.u32 %v1228_v62, %v1224_v4  ;;  %v1730_v63 = vld [vmem:[%s3083_s3] sm:$0x3]  ;;  %v2230_v3 = vld [vmem:[%s2456_s29 + $0x4] sm:$0xf]  ;;  %v1633_v22 = vsel %vm1631_vm14, %v2229_v61, 0 }
 0x1b9   : > { %1363 = vrot.lane.b32.xlu0 %v2018_v12, %s2305_s11  ;;  %1303 = vrot.lane.b32.xlu1 %v2018_v12, %s2308_s28  ;;  %v1214_v31 = vrot.slane %v1212_v27, 1  ;;  %v2231_v5 = vld [vmem:[%s2456_s29] sm:$0xf]  ;;  %v2865_v11 = vsel %vm1764_vm15, %v1730_v63, 0  ;;  %v2232_v12 = vld [vmem:[%s2456_s29 + $0xc] sm:$0xf] }
 0x1ba   : > { %v2795_v28 = vld [vmem:[#allocation3 + $0x38] sm:$0xf]  ;;  %v1150_v36 = vld [vmem:[#allocation3 + $0x3c] sm:$0x1]  ;;  %2109 = vmatpush3.bf16.msra.mxu1 %v2226_v44  ;;  %v2043_v6 = vcombine.low %v2231_v5, %v2230_v3  ;;  %2137 = vmatprep.subr.msk.bf16.mxu0 %vm1764_vm15, %v1730_v63  ;;  %v2233_v13 = vld [vmem:[%s2456_s29 + $0x8] sm:$0xf] }
 0x1bb   : > { %v2023_v30 = vcombine.low %v2795_v28, %v2795_v28  ;;  %v1215_v34 = vor.u32 %v1214_v31, %v1210_v32  ;;  %v2803_v2 = vld [vmem:[#allocation3 + $0x28] sm:$0xf]  ;;  %v2016_v47 = vcombine.low %v2795_v28, %v1150_v36  ;;  %v1146_v15 = vld [vmem:[#allocation3 + $0x2c] sm:$0x1]  ;;  %2110 = vmatprep.subr.bf16.mxu1 %v2227_v50  ;;  %2125 = vmatpush3.bf16.msra.mxu0 %v2865_v11  ;;  %v2890_v4 = vpop.permute.xlu1 %1403  ;;  %v1405_v27 = vrot.slane %v2663_v55, 1 }
 0x1bc   : > { %v2021_v37 = vcombine.low %v2803_v2, %v2803_v2  ;;  %v1151_v39 = vld [vmem:[#allocation3 + $0x40] sm:$0xf]  ;;  %v2818_v41 = vcombine.low %v2803_v2, %v1146_v15  ;;  %v1152_v45 = vld [vmem:[#allocation3 + $0x44] sm:$0x1]  ;;  %v2044_v42 = vcombine.low %v2233_v13, %v2232_v12  ;;  %2126 = vmatprep.mubr.msk.bf16.mxu0 %vm1751_vm0, %v2043_v6 }
 0x1bd   : > { %1410 = vrot.lane.b32.xlu0 %v1271_v26, %s2310_s25  ;;  %1350 = vrot.lane.b32.xlu1 %v1271_v26, %s2309_s20  ;;  %v2810_v38 = vrot.slane %v2016_v47, 1  ;;  %v2024_v40 = vcombine.low %v1151_v39, %v1151_v39  ;;  %v2832_v46 = vld [vmem:[#allocation3 + $0x30] sm:$0xf]  ;;  %v2836_v49 = vcombine.low %v1151_v39, %v1152_v45  ;;  %v1148_v51 = vld [vmem:[#allocation3 + $0x34] sm:$0x1]  ;;  %v1247_v53 = vshll.u32 %v2016_v47, 16 }
 0x1be   : > { %v1272_v43 = vrot.slane %v2818_v41, 1  ;;  %v2022_v48 = vcombine.low %v2832_v46, %v2832_v46  ;;  %2111 = vmatpush3.bf16.msra.mxu1 %v2227_v50  ;;  %v2015_v56 = vcombine.low %v2832_v46, %v1148_v51  ;;  %v1245_v0 = vshrl.u32 %v2016_v47, 16  ;;  %2127 = vmatmul.mubr.msk.bf16.vlgmr.msra.gmra.mrb[8].mxu0 %vm1751_vm0, %v2044_v42 }
 0x1bf   : > { %v1343_v52 = vrot.slane %v2836_v49, 1  ;;  %2112 = vmatprep.subr.bf16.mxu1 %v2228_v54  ;;  %v1249_v58 = vrot.slane %v1247_v53, 1  ;;  %v1233_v10 = vshll.u32 %v2818_v41, 16  ;;  %v1321_v17 = vshrl.u32 %v2836_v49, 16 }
 0x1c0   : > { %v1273_v57 = vrot.slane %v2015_v56, 1  ;;  %v1238_v20 = vshrl.u32 %v2015_v56, 16 }
 0x1c1   : > { %1283 = vrot.lane.b32.xlu0 %v1271_v26, %s2303_s30  ;;  %1346 = vrot.lane.b32.xlu1 %v1269_v16, %s2309_s20  ;;  %v1250_v8 = vor.u32 %v1249_v58, %v1245_v0  ;;  %v1231_v26 = vshrl.u32 %v2818_v41, 16  ;;  %v1235_v29 = vrot.slane %v1233_v10, 1 }
 0x1c2   : > { %2113 = vmatpush3.bf16.msra.mxu1 %v2228_v54 }
 0x1c3   : > { %2136 = vmatprep.subr.msk.bf16.mxu1 %vm1631_vm14, %v2229_v61  ;;  %v1236_v14 = vor.u32 %v1235_v29, %v1231_v26 }
 0x1c5   : > { %1257 = vrot.lane.b32.xlu1 %v1222_v18, %s3093_s12  ;;  %1279 = vrot.lane.b32.xlu0 %v1269_v16, %s2303_s30 }
 0x1c6   : > { %2115 = vmatpush3.bf16.msra.mxu1 %v1633_v22 }
 0x1c7   : > { %2138 = vmatprep.subr.msk.bf16.mxu1 %vm1764_vm15, %v1730_v63 }
 0x1c9   : > { %1391 = vrot.lane.b32.xlu1 %v1222_v18, %s2307_s18  ;;  %1406 = vrot.lane.b32.xlu0 %v1269_v16, %s2310_s25  ;;  %v1323_v16 = vshll.u32 %v2836_v49, 16 }
 0x1cb   : > { %v1325_v33 = vrot.slane %v1323_v16, 1 }
 0x1cd   : > { %1253 = vrot.lane.b32.xlu1 %v1208_v25, %s3093_s12  ;;  %1331 = vrot.lane.b32.xlu0 %v1222_v18, %s3091_s21  ;;  %v1240_v18 = vshll.u32 %v2015_v56, 16  ;;  %v1326_v19 = vor.u32 %v1325_v33, %v1321_v17 }
 0x1cf   : > { %v1242_v23 = vrot.slane %v1240_v18, 1 }
 0x1d1   : > { %1333 = vrot.lane.b32.xlu1 %v1229_v1, %s3091_s21  ;;  %1327 = vrot.lane.b32.xlu0 %v1208_v25, %s3091_s21  ;;  %v1252_v25 = vpop.permute.xlu0 %1251  ;;  %v1243_v62 = vor.u32 %v1242_v23, %v1238_v20 }
 0x1d2   : > { %v1425_v10 = vsel %vm1422_vm1, %v2660_v21, %v1252_v25 }
 0x1d5   : > { %1393 = vrot.lane.b32.xlu0 %v1229_v1, %s2307_s18  ;;  %1373 = vrot.lane.b32.xlu1 %v2023_v30, %s2305_s11 }
 0x1d9   : > { %1259 = vrot.lane.b32.xlu0 %v1229_v1, %s3093_s12  ;;  %1329 = vrot.lane.b32.xlu1 %v1215_v34, %s3091_s21  ;;  %v1276_v1 = vpop.permute.xlu0 %1275 }
 0x1da   : > { %v1448_v13 = vsel %vm721_vm6, %v1425_v10, %v1276_v1 }
 0x1dd   : > { %1313 = vrot.lane.b32.xlu0 %v2023_v30, %s2308_s28  ;;  %1369 = vrot.lane.b32.xlu1 %v2021_v37, %s2305_s11 }
 0x1e1   : > { %1255 = vrot.lane.b32.xlu0 %v1215_v34, %s3093_s12  ;;  %1289 = vrot.lane.b32.xlu1 %v2810_v38, %s2303_s30  ;;  %s2311_s12 = smov [#allocation4]  }
 0x1e5   : > { %1389 = vrot.lane.b32.xlu0 %v1215_v34, %s2307_s18  ;;  %1315 = vrot.lane.b32.xlu1 %v2024_v40, %s2308_s28 }
 0x1e9   : > { %1309 = vrot.lane.b32.xlu0 %v2021_v37, %s2308_s28  ;;  %1412 = vrot.lane.b32.xlu1 %v1272_v43, %s2310_s25 }
 0x1ed   : > { %1356 = vrot.lane.b32.xlu0 %v2810_v38, %s2309_s20  ;;  %1285 = vrot.lane.b32.xlu1 %v1272_v43, %s2303_s30 }
 0x1f1   : > { %1375 = vrot.lane.b32.xlu0 %v2024_v40, %s2305_s11  ;;  %1311 = vrot.lane.b32.xlu1 %v2022_v48, %s2308_s28 }
 0x1f5   : > { %1352 = vrot.lane.b32.xlu0 %v1272_v43, %s2309_s20  ;;  %1358 = vrot.lane.b32.xlu1 %v1343_v52, %s2309_s20 }
 0x1f9   : > { %1371 = vrot.lane.b32.xlu0 %v2022_v48, %s2305_s11  ;;  %1354 = vrot.lane.b32.xlu1 %v1273_v57, %s2309_s20  ;;  %s3105_s11 = smov 8   ;;  %s2067_s20 = sshll.u32 %s2389_s17, 10 }
 0x1fa   : > { %s3026_s21 = scalar_lea.hbm %s3090_s10, %s2067_s20  ;;  %s3038_s17 = scalar_lea.sflag [#allocation5], %s350_s26 }
 0x1fd   : > { %1265 = vrot.lane.b32.xlu1 %v1250_v8, %s3105_s11  ;;  %1287 = vrot.lane.b32.xlu0 %v1273_v57, %s2303_s30  ;;  %s3106_s30 = smov 32  }
 0x201   : > { %1399 = vrot.lane.b32.xlu1 %v1250_v8, %s2307_s18  ;;  %1414 = vrot.lane.b32.xlu0 %v1273_v57, %s2310_s25 }
 0x205   : > { %1395 = vrot.lane.b32.xlu1 %v1236_v14, %s2307_s18  ;;  %1339 = vrot.lane.b32.xlu0 %v1250_v8, %s3106_s30 }
 0x209   : > { %1261 = vrot.lane.b32.xlu1 %v1236_v14, %s3105_s11  ;;  %1335 = vrot.lane.b32.xlu0 %v1236_v14, %s3106_s30 }
 0x20d   : > { %1341 = vrot.lane.b32.xlu1 %v1326_v19, %s3106_s30  ;;  %1401 = vrot.lane.b32.xlu0 %v1326_v19, %s2307_s18 }
 0x211   : > { %1337 = vrot.lane.b32.xlu1 %v1243_v62, %s3106_s30  ;;  %1263 = vrot.lane.b32.xlu0 %v1243_v62, %s3105_s11  ;;  %s1967_s30 = sshll.u32 %s350_s26, 6 }
 0x215   : > { %1416 = vrot.lane.b32.xlu1 %v2810_v38, %s2310_s25  ;;  %1397 = vrot.lane.b32.xlu0 %v1243_v62, %s2307_s18  ;;  %s3009_s18 = scalar_lea.vmem [#allocation4], %s1967_s30  ;;  %s2242_s30 = sshll.u32 %s2311_s12, 4  ;;  %s2243_s30 = int_to_ptr.vmem [resolvable:$false] %s2242_s30 }
 0x216   : > { %s2244_s20 = scalar_lea.vmem %s2243_s30, 2048 }
 0x217   : > { %v1366_v30 = vpop.permute.xlu1 %1365  ;;  %v1306_v31 = vpop.permute.xlu0 %1305 }
 0x219   : > { %1420 = vrot.lane.b32.xlu1 %v1405_v27, %s2310_s25  ;;  %1418 = vrot.lane.b32.xlu0 %v1343_v52, %s2310_s25  ;;  %s1901_s25 = sshll.u32 %s3009_s18, 4  ;;  %s3030_s25 = int_to_ptr.vmem [resolvable:$true] %s1901_s25 }
 0x21a   : > { %p2245_p0 = scmp.lt.s32.totalorder %s3030_s25, %s2243_s30 }
 0x21b   : > { %v1282_v32 = vpop.permute.xlu1 %1281  ;;  %v1302_v34 = vpop.permute.xlu0 %1301 }
 0x21f   : > { %v1308_v36 = vpop.permute.xlu1 %1307  ;;  %v1349_v37 = vpop.permute.xlu0 %1348 }
 0x223   : > { %v1409_v47 = vpop.permute.xlu1 %1408  ;;  %v1368_v39 = vpop.permute.xlu0 %1367 }
 0x227   : > { %v1278_v15 = vpop.permute.xlu1 %1277  ;;  %v1345_v38 = vpop.permute.xlu0 %1344 }
 0x22b   : > { %v1304_v40 = vpop.permute.xlu1 %1303  ;;  %v1364_v41 = vpop.permute.xlu0 %1363 }
 0x22f   : > { %v1351_v43 = vpop.permute.xlu1 %1350  ;;  %v1411_v55 = vpop.permute.xlu0 %1410 }
 0x233   : > { %v1347_v24 = vpop.permute.xlu1 %1346  ;;  %v2900_v44 = vpop.permute.xlu0 %1283 }
 0x237   : > { %v1258_v45 = vpop.permute.xlu1 %1257  ;;  %v1280_v48 = vpop.permute.xlu0 %1279 }
 0x238   : > { %v1434_v49 = vsel %vm1422_vm1, %v2717_v59, %v1258_v45 }
 0x239   : > { %v1454_v50 = vsel %vm721_vm6, %v1434_v49, %v1282_v32 }
 0x23a   : > { %v1471_v51 = vsel %vm1463_vm2, %v1454_v50, %v1308_v36 }
 0x23b   : > { %v1392_v52 = vpop.permute.xlu1 %1391  ;;  %v1407_v53 = vpop.permute.xlu0 %1406 }
 0x23f   : > { %v1254_v54 = vpop.permute.xlu1 %1253  ;;  %v1332_v56 = vpop.permute.xlu0 %1331 }
 0x240   : > { %v1428_v63 = vsel %vm1422_vm1, %v2725_v7, %v1254_v54  ;;  %v1465_v7 = vsel %vm1463_vm2, %v1448_v13, %v1302_v34 }
 0x241   : > { %v1450_v5 = vsel %vm721_vm6, %v1428_v63, %v1278_v15 }
 0x242   : > { %v1467_v22 = vsel %vm1463_vm2, %v1450_v5, %v1304_v40 }
 0x243   : > { %v1334_v57 = vpop.permute.xlu1 %1333  ;;  %v1328_v0 = vpop.permute.xlu0 %1327 }
 0x244   : > { %v1487_v58 = vsel %vm746_vm7, %v1471_v51, %v1334_v57  ;;  %v1481_v14 = vsel %vm746_vm7, %v1465_v7, %v1328_v0 }
 0x245   : > { %v1504_v61 = vsel %vm1496_vm3, %v1487_v58, %v1351_v43  ;;  %v1498_v21 = vsel %vm1496_vm3, %v1481_v14, %v1345_v38 }
 0x246   : > { %v1514_v1 = vsel %vm763_vm8, %v1498_v21, %v1364_v41 }
 0x247   : > { %v2910_v59 = vpop.permute.xlu1 %1373  ;;  %v1394_v3 = vpop.permute.xlu0 %1393 }
 0x24b   : > { %v1330_v6 = vpop.permute.xlu1 %1329  ;;  %v1260_v8 = vpop.permute.xlu0 %1259 }
 0x24c   : > { %v1483_v12 = vsel %vm746_vm7, %v1467_v22, %v1330_v6  ;;  %v1437_v6 = vsel %vm1422_vm1, %v2738_v35, %v1260_v8 }
 0x24d   : > { %v1500_v29 = vsel %vm1496_vm3, %v1483_v12, %v1347_v24  ;;  %v1456_v22 = vsel %vm721_vm6, %v1437_v6, %v2900_v44 }
 0x24e   : > { %v1516_v16 = vsel %vm763_vm8, %v1500_v29, %v1366_v30 }
 0x24f   : > { %v1370_v42 = vpop.permute.xlu1 %1369  ;;  %v2918_v26 = vpop.permute.xlu0 %1313  ;;  %v1533_v23 = vsel %vm1529_vm4, %v1516_v16, %v1392_v52 }
 0x250   : > { %v1520_v54 = vsel %vm763_vm8, %v1504_v61, %v1370_v42 }
 0x253   : > { %v1290_v17 = vpop.permute.xlu1 %1289  ;;  %v1256_v33 = vpop.permute.xlu0 %1255 }
 0x254   : > { %v1431_v18 = vsel %vm1422_vm1, %v2765_v9, %v1256_v33  ;;  %v1549_v9 = vsel %vm832_vm9, %v1533_v23, %v1409_v47 }
 0x255   : > { %v1452_v19 = vsel %vm721_vm6, %v1431_v18, %v1280_v48 }
 0x256   : > { %v1469_v20 = vsel %vm1463_vm2, %v1452_v19, %v1306_v31 }
 0x257   : > { %v1485_v25 = vsel %vm746_vm7, %v1469_v20, %v1332_v56  ;;  %v1316_v62 = vpop.permute.xlu1 %1315  ;;  %v1390_v27 = vpop.permute.xlu0 %1389 }
 0x258   : > { %v1502_v30 = vsel %vm1496_vm3, %v1485_v25, %v1349_v37  ;;  %v1531_v32 = vsel %vm1529_vm4, %v1514_v1, %v1390_v27 }
 0x259   : > { %v1547_v34 = vsel %vm832_vm9, %v1531_v32, %v1407_v53  ;;  %v1518_v36 = vsel %vm763_vm8, %v1502_v30, %v1368_v39 }
 0x25a   : > { %v2028_v31 = vcombine.low %v1547_v34, %v1549_v9  ;;  %v1535_v15 = vsel %vm1529_vm4, %v1518_v36, %v1394_v3 }
 0x25b   : > { %v1413_v38 = vpop.permute.xlu1 %1412  ;;  %v1310_v40 = vpop.permute.xlu0 %1309  ;;  %v1551_v43 = vsel %vm832_vm9, %v1535_v15, %v1411_v55 }
 0x25c   : > { %2116 = vmatprep.mubr.msk.bf16.mxu1 %vm1618_vm5, %v2028_v31 }
 0x25f   : > { %v1286_v41 = vpop.permute.xlu1 %1285  ;;  %v1357_v37 = vpop.permute.xlu0 %1356 }
 0x263   : > { %v1312_v24 = vpop.permute.xlu1 %1311  ;;  %v1376_v45 = vpop.permute.xlu0 %1375 }
 0x267   : > { %v1359_v48 = vpop.permute.xlu1 %1358  ;;  %v1353_v49 = vpop.permute.xlu0 %1352 }
 0x26b   : > { %v1355_v50 = vpop.permute.xlu1 %1354  ;;  %v1372_v47 = vpop.permute.xlu0 %1371 }
 0x26f   : > { %v1266_v51 = vpop.permute.xlu1 %1265  ;;  %v1288_v52 = vpop.permute.xlu0 %1287 }
 0x270   : > { %v1446_v63 = vsel %vm1422_vm1, %v2795_v28, %v1266_v51  ;;  %v1473_v28 = vsel %vm1463_vm2, %v1456_v22, %v1310_v40  ;;  %v2234_v40 = vld [vmem:[%s2456_s29 + $0x10] sm:$0xf]  ;;  %v2051_v51 = vld [vmem:[%s3088_s8] ss:$0 sm:$0xff] }
 0x271   : > { %v1462_v10 = vsel %vm721_vm6, %v1446_v63, %v1290_v17 }
 0x272   : > { %v1479_v8 = vsel %vm1463_vm2, %v1462_v10, %v1316_v62 }
 0x273   : > { %v1400_v39 = vpop.permute.xlu1 %1399  ;;  %v1415_v53 = vpop.permute.xlu0 %1414 }
 0x277   : > { %v1396_v56 = vpop.permute.xlu1 %1395  ;;  %v1340_v57 = vpop.permute.xlu0 %1339 }
 0x278   : > { %v1537_v55 = vsel %vm1529_vm4, %v1520_v54, %v1396_v56 }
 0x279   : > { %v1553_v0 = vsel %vm832_vm9, %v1537_v55, %v1413_v38  ;;  %v2042_v55 = vld [vmem:[%s3087_s7] ss:$0 sm:$0xff] }
 0x27a   : > { %v2029_v58 = vcombine.low %v1551_v43, %v1553_v0  ;;  %v2235_v43 = vld [vmem:[%s2456_s29 + $0x14] sm:$0xf] }
 0x27b   : > { %v1262_v3 = vpop.permute.xlu1 %1261  ;;  %v1336_v5 = vpop.permute.xlu0 %1335 }
 0x27c   : > { %2117 = vmatmul.mubr.msk.bf16.vlgmr.msra.gmra.mrb[0].mxu1 %vm1618_vm5, %v2029_v58  ;;  %v1440_v61 = vsel %vm1422_vm1, %v2803_v2, %v1262_v3  ;;  %v1489_v35 = vsel %vm746_vm7, %v1473_v28, %v1336_v5 }
 0x27d   : > { %2135 = vmatpush3.bf16.msra.mxu1 %v2865_v11  ;;  %v1458_v42 = vsel %vm721_vm6, %v1440_v61, %v1286_v41  ;;  %v1506_v14 = vsel %vm1496_vm3, %v1489_v35, %v1353_v49  ;;  %v2045_v41 = vcombine.low %v2234_v40, %v2235_v43 }
 0x27e   : > { %v1475_v2 = vsel %vm1463_vm2, %v1458_v42, %v1312_v24  ;;  %v1522_v62 = vsel %vm763_vm8, %v1506_v14, %v1372_v47  ;;  %v2236_v24 = vld [vmem:[%s2456_s29 + $0x18] sm:$0xf] }
 0x27f   : > { %v1342_v12 = vpop.permute.xlu1 %1341  ;;  %v1402_v13 = vpop.permute.xlu0 %1401 }
 0x280   : > { %v1495_v7 = vsel %vm746_vm7, %v1479_v8, %v1342_v12 }
 0x281   : > { %v1512_v17 = vsel %vm1496_vm3, %v1495_v7, %v1359_v48 }
 0x283   : > { %v1338_v11 = vpop.permute.xlu1 %1337  ;;  %v1264_v29 = vpop.permute.xlu0 %1263 }
 0x284   : > { %v1491_v44 = vsel %vm746_vm7, %v1475_v2, %v1338_v11  ;;  %v1443_v16 = vsel %vm1422_vm1, %v2832_v46, %v1264_v29 }
 0x285   : > { %v1508_v33 = vsel %vm1496_vm3, %v1491_v44, %v1355_v50  ;;  %v1460_v21 = vsel %vm721_vm6, %v1443_v16, %v1288_v52 }
 0x286   : > { %v1477_v18 = vsel %vm1463_vm2, %v1460_v21, %v2918_v26  ;;  %v1524_v19 = vsel %vm763_vm8, %v1508_v33, %v2910_v59  ;;  %v1528_v26 = vsel %vm763_vm8, %v1512_v17, %v2884_v60 }
 0x287   : > { %v1493_v20 = vsel %vm746_vm7, %v1477_v18, %v1340_v57  ;;  %v1541_v23 = vsel %vm1529_vm4, %v1524_v19, %v1400_v39  ;;  %v1417_v25 = vpop.permute.xlu1 %1416  ;;  %v1398_v46 = vpop.permute.xlu0 %1397  ;;  %v1545_v36 = vsel %vm1529_vm4, %v1528_v26, %v2890_v4  ;;  %v2041_v39 = vld [vmem:[%s3086_s6] ss:$0 sm:$0xff] }
 0x288   : > { %v1557_v1 = vsel %vm832_vm9, %v1541_v23, %v1417_v25  ;;  %v1539_v27 = vsel %vm1529_vm4, %v1522_v62, %v1398_v46  ;;  %v1510_v30 = vsel %vm1496_vm3, %v1493_v20, %v1357_v37 }
 0x289   : > { %v1555_v59 = vsel %vm832_vm9, %v1539_v27, %v1415_v53  ;;  %v1526_v32 = vsel %vm763_vm8, %v1510_v30, %v1376_v45  ;;  %v2237_v45 = vld [vmem:[%s2456_s29 + $0x1c] sm:$0xf]  ;;  %v2052_v53 = vld [vmem:[%s3089_s9] ss:$0 sm:$0xff]  ;;  %s2238_s29 = scalar_lea.vmem %s3030_s25, 1024 }
 0x28a   : > { %v2030_v34 = vcombine.low %v1555_v59, %v1557_v1  ;;  %v1543_v9 = vsel %vm1529_vm4, %v1526_v32, %v1402_v13  ;;  %v2046_v4 = vcombine.low %v2236_v24, %v2237_v45  ;;  %p2239_p11 = scmp.ne.s32.totalorder %s3030_s25, %s2238_s29  ;;  %p2246_p1 = scmp.lt.s32.totalorder %s2244_s20, %s2238_s29 }
 0x28b   : > { %v1421_v31 = vpop.permute.xlu1 %1420  ;;  %v1419_v15 = vpop.permute.xlu0 %1418 }
 0x28c   : > { %v1561_v38 = vsel %vm832_vm9, %v1545_v36, %v1421_v31  ;;  %v1559_v60 = vsel %vm832_vm9, %v1543_v9, %v1419_v15  ;;  %2120 = vmatprep.mubr.msk.bf16.mxu1 %vm1618_vm5, %v2030_v34  ;;  %p2240_p12 = pnand %p2239_p11, %p2406_p5  ;;  %p2247_p2 = por %p2246_p1, %p2245_p0 }
 0x28d   : > { %v2031_v37 = vcombine.low %v1559_v60, %v1561_v38 }
 0x28e   : > { %p2241_p13 = pneg %p2240_p12 }
 0x28f   : > { %2121 = vmatmul.mubr.msk.bf16.gmra.mrb[4].mxu1 %vm1618_vm5, %v2031_v37 }
 0x290   : > { %2130 = vmatprep.mubr.msk.bf16.mxu1 %vm1751_vm0, %v2045_v41  ;;  %p2248_p3 = pnand %p2247_p2, %p2241_p13 }
 0x291   : > { %v2128_v48 = vpop.f32.mrb[8].mxu0 }
 0x292   : > { %v1802_v49 = vpop.f32.mrb[9].mxu0  ;;  %v1842_v52 = vmul.f32 %v2128_v48, %v2051_v51 }
 0x293   : > { %v2129_v50 = vpop.f32.mrb[10].mxu0  ;;  %v1840_v54 = vmul.f32 %v2051_v51, %v1802_v49 }
 0x294   : > { %v1805_v47 = vpop.f32.mrb[11].mxu0  ;;  %v1843_v56 = vmul.f32 %v2129_v50, %v2051_v51  ;;  %v1857_v63 = vadd.f32 %v2052_v53, %v1842_v52 }
 0x295   : > { %v1841_v0 = vmul.f32 %v2051_v51, %v1805_v47  ;;  %v1855_v6 = vadd.f32 %v2052_v53, %v1840_v54 }
 0x296   : > { %v1858_v12 = vadd.f32 %v2052_v53, %v1843_v56 }
 0x297   : > { %2131 = vmatmul.mubr.msk.bf16.vlgmr.msra.gmra.mrb[8].mxu1 %vm1751_vm0, %v2046_v4  ;;  %v1856_v35 = vadd.f32 %v2052_v53, %v1841_v0 }
 0x34f   : > { %v2118_v57 = vpop.f32.mrb[0].mxu1 }
 0x350   : > { %v1709_v58 = vmul.f32 %v2118_v57, %v2041_v39  ;;  %v1669_v3 = vpop.f32.mrb[1].mxu1 }
 0x351   : > { %v1707_v5 = vmul.f32 %v2041_v39, %v1669_v3  ;;  %v2119_v61 = vpop.f32.mrb[2].mxu1 }
 0x352   : > { %v1724_v10 = vadd.f32 %v2042_v55, %v1709_v58  ;;  %v1710_v22 = vmul.f32 %v2119_v61, %v2041_v39  ;;  %v1672_v13 = vpop.f32.mrb[3].mxu1 }
 0x353   : > { %v1722_v28 = vadd.f32 %v2042_v55, %v1707_v5  ;;  %v1708_v42 = vmul.f32 %v2041_v39, %v1672_v13 }
 0x354   : > { %v1865_v8 = vadd.f32 %v1857_v63, %v1724_v10  ;;  %v1725_v7 = vadd.f32 %v2042_v55, %v1710_v22 }
 0x355   : > { %v1863_v2 = vadd.f32 %v1855_v6, %v1722_v28  ;;  %v1723_v11 = vadd.f32 %v2042_v55, %v1708_v42 }
 0x356   : > { %v1873_v29 = vmax.f32 %v1865_v8, 0.0  ;;  %v1866_v14 = vadd.f32 %v1858_v12, %v1725_v7 }
 0x357   : > { %v1871_v44 = vmax.f32 %v1863_v2, 0.0  ;;  %v1864_v16 = vadd.f32 %v1856_v35, %v1723_v11 }
 0x358   : > { %1881 = vst.msk [vmem:[%s3009_s18 + $0x10] sm:$0xff] %vm1422_vm1, %v1873_v29  ;;  %v1874_v17 = vmax.f32 %v1866_v14, 0.0 }
 0x359   : > { %1879 = vst.msk [vmem:[%s3009_s18] sm:$0xff] %vm1422_vm1, %v1871_v44  ;;  %v1872_v33 = vmax.f32 %v1864_v16, 0.0 }
 0x35a   : > { %1882 = vst.msk [vmem:[%s3009_s18 + $0x18] sm:$0xff] %vm1422_vm1, %v1874_v17 }
 0x35b   : > { %1880 = vst.msk [vmem:[%s3009_s18 + $0x8] sm:$0xff] %vm1422_vm1, %v1872_v33 }
 0x362   : > { %v2122_v21 = vpop.f32.mrb[4].mxu1 }
 0x363   : > { %v1685_v18 = vpop.f32.mrb[5].mxu1  ;;  %v1713_v23 = vmul.f32 %v2122_v21, %v2041_v39 }
 0x364   : > { %v2123_v19 = vpop.f32.mrb[6].mxu1  ;;  %v1711_v25 = vmul.f32 %v2041_v39, %v1685_v18 }
 0x365   : > { %v1688_v20 = vpop.f32.mrb[7].mxu1  ;;  %v1714_v46 = vmul.f32 %v2123_v19, %v2041_v39  ;;  %v1728_v32 = vadd.f32 %v2042_v55, %v1713_v23 }
 0x366   : > { %v1712_v26 = vmul.f32 %v2041_v39, %v1688_v20  ;;  %v1726_v31 = vadd.f32 %v2042_v55, %v1711_v25 }
 0x367   : > { %v1729_v60 = vadd.f32 %v2042_v55, %v1714_v46 }
 0x368   : > { %v1727_v41 = vadd.f32 %v2042_v55, %v1712_v26 }
 0x36a   : > { %v2132_v62 = vpop.f32.mrb[8].mxu1 }
 0x36b   : > { %v1846_v1 = vmul.f32 %v2132_v62, %v2051_v51  ;;  %v1818_v27 = vpop.f32.mrb[9].mxu1 }
 0x36c   : > { %v1844_v30 = vmul.f32 %v2051_v51, %v1818_v27  ;;  %v2133_v59 = vpop.f32.mrb[10].mxu1 }
 0x36d   : > { %v1861_v34 = vadd.f32 %v2052_v53, %v1846_v1  ;;  %v1847_v9 = vmul.f32 %v2133_v59, %v2051_v51  ;;  %v1821_v36 = vpop.f32.mrb[11].mxu1 }
 0x36e   : > { %v1859_v15 = vadd.f32 %v2052_v53, %v1844_v30  ;;  %v1845_v38 = vmul.f32 %v2051_v51, %v1821_v36 }
 0x36f   : > { %v1869_v40 = vadd.f32 %v1861_v34, %v1728_v32  ;;  %v1862_v43 = vadd.f32 %v2052_v53, %v1847_v9 }
 0x370   : > { %v1867_v37 = vadd.f32 %v1859_v15, %v1726_v31  ;;  %v1860_v24 = vadd.f32 %v2052_v53, %v1845_v38 }
 0x371   : > { %v1877_v45 = vmax.f32 %v1869_v40, 0.0  ;;  %v1870_v4 = vadd.f32 %v1862_v43, %v1729_v60 }
 0x372   : > { %v1875_v48 = vmax.f32 %v1867_v37, 0.0  ;;  %v1868_v49 = vadd.f32 %v1860_v24, %v1727_v41 }
 0x373   : > { %1885 = vst.msk [vmem:[%s3009_s18 + $0x30] sm:$0xff] %vm1422_vm1, %v1877_v45  ;;  %v1878_v50 = vmax.f32 %v1870_v4, 0.0 }
 0x374   : > { %1883 = vst.msk [vmem:[%s3009_s18 + $0x20] sm:$0xff] %vm1422_vm1, %v1875_v48  ;;  %v1876_v47 = vmax.f32 %v1868_v49, 0.0 }
 0x375   : > { %1886 = vst.msk [vmem:[%s3009_s18 + $0x38] sm:$0xff] %vm1422_vm1, %v1878_v50 }
 0x376   : > { %1884 = vst.msk [vmem:[%s3009_s18 + $0x28] sm:$0xff] %vm1422_vm1, %v1876_v47 }
 0x377   : > { %2251 = shalt.err (!%p2248_p3)
}
 0x378   : > { %s2252_s26 = scalar_lea.hbm %s3026_s21, 1024  ;;  %s2256_s28 = scalar_lea.hbm %s3090_s10, 2048 }
 0x379   : > { %p2253_p4 = scmp.ne.s32.totalorder %s3026_s21, %s2252_s26  ;;  %p2257_p9 = scmp.lt.u32.totalorder %s3026_s21, %s3090_s10 }
 0x37a   : > { %p2258_p10 = scmp.lt.u32.totalorder %s2256_s28, %s2252_s26  ;;  %p2260_p12 = scmp.lt.u32.totalorder %s2252_s26, %s3026_s21 }
 0x37b   : > { %p2254_p7 = pnand %p2253_p4, %p2406_p5 }
 0x37c   : > { %p2259_p11 = por %p2258_p10, %p2257_p9 }
 0x37d   : > { %p2255_p8 = pneg %p2254_p7 }
 0x37e   : > { %p2261_p13 = por %p2260_p12, %p2259_p11 }
 0x380   : > { %p2262_p0 = pnand %p2261_p13, %p2255_p8 }
 0x382   : > { %2265 = shalt.err (!%p2262_p0)
}
 0x383   : > { %s2312_s29 = smov 128  }
 0x384   : > { %2139 = dma.vmem_to_hbm [thread:$0]  (%p2406_p5), %s3030_s25, 1024, %s3026_s21, %s3038_s17, %s2312_s29, %s2312_s29, %s3105_s11  }
 0x385 PF: > { %p2145_p1 = scmp.ge.s32.totalorder %s2300_s16, 2  ;;  %s1916_s20 = sand.u32 1, %s2288_s13  }
 0x386   : > { %s1917_s26 = scalar_lea.sflag [#allocation5], %s1916_s20 }
 0x387   : > { %p2142_p2 = pnand %p2145_p1, %p2410_p6 }
 0x389   : > { %2283 = dma.done.wait (!%p2142_p2), %s1917_s26, 1024  }
 0x38a   : > { %2285 = vsyncadd (!%p2142_p2), %s1917_s26, 4294966272  ;;  %p20_p3 = scmp.ge.s32.totalorder %s2393_s19, 4   ;;  %s3107_s13 = smov %s2292_s14 }
 0x38b   : > { %s3108_s14 = smov %s2296_s15  ;;  %s3109_s15 = smov %s2404_s22 }
 0x38c   : > { %s3110_s16 = smov %s2393_s19  ;;  %22 = sbr.rel (!%p20_p3) target bundleno = 3 (0x3), region = 97 }
 0x393   :  { %1922 = vsyncpa [#allocation5], 1 }
 0x394   :  { %1924 = vsyncpa [#allocation5 + $0x1], 1 }

</bundles_post_ra>
